<compile_context>
chip_gen: v7x
topology: tpu7x:2x2x1
jax: 0.10.0
libtpu: 0.0.40
codegen_flags: <defaults>
</compile_context>

<pallas_src>
import jax
import jax.numpy as jnp
from jax.experimental import pallas as pl
from jax.experimental.pallas import tpu as pltpu

IN_FEATURES = 8 * 8 * 17   # 1088
H1 = 256
H2 = 128
ACTION_SIZE = 16
N3_PAD = 128               # lane-padded fc3 output width
TM = 256                   # MXU-aligned row tile; M padded to a multiple of TM


def dqn_kernel(x_ref, w1_ref, b1_ref, w2_ref, b2_ref, w3_ref, b3_ref, o_ref):
    # fc1: bf16 MXU matmul, fp32 accumulation, fp32 bias + relu
    h1 = jnp.dot(x_ref[...], w1_ref[...], preferred_element_type=jnp.float32)
    h1 = jnp.maximum(h1 + b1_ref[...], 0.0)
    # fc2
    h2 = jnp.dot(h1.astype(jnp.bfloat16), w2_ref[...],
                 preferred_element_type=jnp.float32)
    h2 = jnp.maximum(h2 + b2_ref[...], 0.0)
    # fc3 (output lane-padded to 128; no activation)
    o = jnp.dot(h2.astype(jnp.bfloat16), w3_ref[...],
                preferred_element_type=jnp.float32)
    o_ref[...] = o + b3_ref[...]


def dqn_forward(x, params):
    """x: any array whose torch-style view(1088, -1) yields (M, 1088)."""
    w1, b1, w2, b2, w3, b3 = params
    xm = x.reshape(IN_FEATURES, -1)          # replicate x.view(8*8*17, -1)
    M, K = xm.shape
    assert K == IN_FEATURES, "fc1 requires the viewed trailing dim to be 1088"
    A = w3.shape[1]

    # bf16 operands for the MXU; fp32 accumulation happens inside the kernel.
    xm_bf = xm.astype(jnp.bfloat16)
    w1_bf = w1.astype(jnp.bfloat16)
    w2_bf = w2.astype(jnp.bfloat16)

    # Zero-pad rows to an MXU-aligned multiple of TM (1088 -> 1280, grid=5).
    M_pad = pl.cdiv(M, TM) * TM
    if M_pad != M:
        xm_bf = jnp.pad(xm_bf, ((0, M_pad - M), (0, 0)))

    # Pad fc3 output to 128 lanes (dense stores); extra columns are zero.
    w3_p = jnp.zeros((H2, N3_PAD), jnp.float32).at[:, :A].set(w3).astype(jnp.bfloat16)
    b3_p = jnp.zeros((1, N3_PAD), jnp.float32).at[:, :A].set(b3)

    flops = int(2 * M_pad * (K * H1 + H1 * H2 + H2 * N3_PAD))
    bytes_accessed = int(
        2 * (xm_bf.size + w1_bf.size + w2_bf.size + w3_p.size)   # bf16 streams
        + 4 * (b1.size + b2.size + b3_p.size)                    # fp32 biases
        + 4 * M_pad * N3_PAD                                     # fp32 output
    )

    out = pl.pallas_call(
        dqn_kernel,
        out_shape=jax.ShapeDtypeStruct((M_pad, N3_PAD), jnp.float32),
        grid_spec=pltpu.PrefetchScalarGridSpec(
            num_scalar_prefetch=0,
            grid=(M_pad // TM,),
            in_specs=[
                pl.BlockSpec((TM, K), lambda i: (i, 0)),        # x tile (bf16)
                pl.BlockSpec((K, H1), lambda i: (0, 0)),        # W1^T (1088, 256)
                pl.BlockSpec((1, H1), lambda i: (0, 0)),        # b1 (fp32)
                pl.BlockSpec((H1, H2), lambda i: (0, 0)),       # W2^T (256, 128)
                pl.BlockSpec((1, H2), lambda i: (0, 0)),        # b2 (fp32)
                pl.BlockSpec((H2, N3_PAD), lambda i: (0, 0)),   # W3^T padded (128, 128)
                pl.BlockSpec((1, N3_PAD), lambda i: (0, 0)),    # b3 padded (fp32)
            ],
            out_specs=pl.BlockSpec((TM, N3_PAD), lambda i: (i, 0)),
        ),
        compiler_params=pltpu.CompilerParams(
            dimension_semantics=("parallel",)),
        cost_estimate=pl.CostEstimate(
            flops=flops, transcendentals=0, bytes_accessed=bytes_accessed),
    )(xm_bf, w1_bf, b1, w2_bf, b2, w3_p, b3_p)

    # Drop padded rows and padded output lanes.
    return out[:M, :A]


def init_params(key, action_size=ACTION_SIZE):
    """Deterministic init mimicking nn.Linear default: U(-1/sqrt(fan_in), +)."""
    def linear(key, fan_in, fan_out):
        kw, kb = jax.random.split(key)
        bound = 1.0 / jnp.sqrt(fan_in)
        # stored as (in, out) so the kernel does x @ W directly
        w = jax.random.uniform(kw, (fan_in, fan_out), jnp.float32, -bound, bound)
        b = jax.random.uniform(kb, (1, fan_out), jnp.float32, -bound, bound)
        return w, b

    k1, k2, k3 = jax.random.split(key, 3)
    w1, b1 = linear(k1, IN_FEATURES, H1)
    w2, b2 = linear(k2, H1, H2)
    w3, b3 = linear(k3, H2, action_size)
    return (w1, b1, w2, b2, w3, b3)


def dqn_reference(x, params):
    """Pure-JAX reference with the same bf16-matmul / fp32-accumulate numerics."""
    w1, b1, w2, b2, w3, b3 = params
    xm = x.reshape(IN_FEATURES, -1).astype(jnp.bfloat16)
    h1 = jnp.maximum(
        jnp.dot(xm, w1.astype(jnp.bfloat16),
                preferred_element_type=jnp.float32) + b1, 0.0)
    h2 = jnp.maximum(
        jnp.dot(h1.astype(jnp.bfloat16), w2.astype(jnp.bfloat16),
                preferred_element_type=jnp.float32) + b2, 0.0)
    return jnp.dot(h2.astype(jnp.bfloat16), w3.astype(jnp.bfloat16),
                   preferred_element_type=jnp.float32) + b3


if __name__ == "__main__":
    key = jax.random.PRNGKey(0)
    kx, kp = jax.random.split(key)

    # NCHW input: the module's view(1088, -1) only type-checks with batch = 1088.
    x = jax.random.normal(kx, (IN_FEATURES, 17, 8, 8), dtype=jnp.float32)
    params = init_params(kp, ACTION_SIZE)

    out = dqn_forward(x, params)
    out = jax.block_until_ready(out)

    ref = dqn_reference(x, params)
    assert out.shape == (IN_FEATURES, ACTION_SIZE)
    # bf16 matmuls with fp32 accumulation: loose-ish tolerance vs the reference
    # (which uses identical casting; residual diff is accumulation order only).
    assert jnp.allclose(out, ref, atol=1e-2, rtol=1e-2), "mismatch vs reference"

    print("KERNEL_OK")
</pallas_src>

<mosaic_0001>
module attributes {stable_mosaic.version = 11 : i64} {
  func.func @dqn_kernel(%arg0: i32, %arg1: memref<256x1088xbf16, #tpu.memory_space<vmem>>, %arg2: memref<1088x256xbf16, #tpu.memory_space<vmem>>, %arg3: memref<1x256xf32, #tpu.memory_space<vmem>>, %arg4: memref<256x128xbf16, #tpu.memory_space<vmem>>, %arg5: memref<1x128xf32, #tpu.memory_space<vmem>>, %arg6: memref<128x128xbf16, #tpu.memory_space<vmem>>, %arg7: memref<1x128xf32, #tpu.memory_space<vmem>>, %arg8: memref<256x128xf32, #tpu.memory_space<vmem>>) attributes {dimension_semantics = [#tpu.dimension_semantics<parallel>], iteration_bounds = array<i64: 5>, scalar_prefetch = 0 : i64, scratch_operands = 0 : i64, tpu.core_type = #tpu.core_type<tc>, window_params = [{transform_indices = @transform_0, window_bounds = array<i64: 256, 1088>}, {pipeline_mode = #tpu.pipeline_mode<synchronous>, transform_indices = @transform_1, window_bounds = array<i64: 1088, 256>}, {pipeline_mode = #tpu.pipeline_mode<synchronous>, transform_indices = @transform_2, window_bounds = array<i64: 1, 256>}, {pipeline_mode = #tpu.pipeline_mode<synchronous>, transform_indices = @transform_3, window_bounds = array<i64: 256, 128>}, {pipeline_mode = #tpu.pipeline_mode<synchronous>, transform_indices = @transform_4, window_bounds = array<i64: 1, 128>}, {pipeline_mode = #tpu.pipeline_mode<synchronous>, transform_indices = @transform_5, window_bounds = array<i64: 128, 128>}, {pipeline_mode = #tpu.pipeline_mode<synchronous>, transform_indices = @transform_6, window_bounds = array<i64: 1, 128>}, {transform_indices = @transform_7, window_bounds = array<i64: 256, 128>}]} {
    %c0 = arith.constant 0 : index
    %c0_0 = arith.constant 0 : index
    %0 = vector.load %arg1[%c0, %c0_0] : memref<256x1088xbf16, #tpu.memory_space<vmem>>, vector<256x1088xbf16>
    %c0_1 = arith.constant 0 : index
    %c0_2 = arith.constant 0 : index
    %1 = vector.load %arg2[%c0_1, %c0_2] : memref<1088x256xbf16, #tpu.memory_space<vmem>>, vector<1088x256xbf16>
    %cst = arith.constant dense<0.000000e+00> : vector<256x256xf32>
    %2 = tpu.matmul %0, %1, %cst {dimension_numbers = #tpu.dot_dimension_numbers<[1], [0], [0], [1], [0, 0, 1, 1], [], []>} : vector<256x1088xbf16>, vector<1088x256xbf16>, vector<256x256xf32> -> vector<256x256xf32>
    %c0_3 = arith.constant 0 : index
    %c0_4 = arith.constant 0 : index
    %3 = vector.load %arg3[%c0_3, %c0_4] : memref<1x256xf32, #tpu.memory_space<vmem>>, vector<1x256xf32>
    %4 = vector.broadcast %3 : vector<1x256xf32> to vector<256x256xf32>
    %5 = arith.addf %2, %4 : vector<256x256xf32>
    %cst_5 = arith.constant 0.000000e+00 : f32
    %6 = vector.broadcast %cst_5 : f32 to vector<256x256xf32>
    %7 = arith.maximumf %5, %6 : vector<256x256xf32>
    %8 = arith.truncf %7 : vector<256x256xf32> to vector<256x256xbf16>
    %c0_6 = arith.constant 0 : index
    %c0_7 = arith.constant 0 : index
    %9 = vector.load %arg4[%c0_6, %c0_7] : memref<256x128xbf16, #tpu.memory_space<vmem>>, vector<256x128xbf16>
    %cst_8 = arith.constant dense<0.000000e+00> : vector<256x128xf32>
    %10 = tpu.matmul %8, %9, %cst_8 {dimension_numbers = #tpu.dot_dimension_numbers<[1], [0], [0], [1], [0, 0, 1, 1], [], []>} : vector<256x256xbf16>, vector<256x128xbf16>, vector<256x128xf32> -> vector<256x128xf32>
    %c0_9 = arith.constant 0 : index
    %c0_10 = arith.constant 0 : index
    %11 = vector.load %arg5[%c0_9, %c0_10] : memref<1x128xf32, #tpu.memory_space<vmem>>, vector<1x128xf32>
    %12 = vector.broadcast %11 : vector<1x128xf32> to vector<256x128xf32>
    %13 = arith.addf %10, %12 : vector<256x128xf32>
    %cst_11 = arith.constant 0.000000e+00 : f32
    %14 = vector.broadcast %cst_11 : f32 to vector<256x128xf32>
    %15 = arith.maximumf %13, %14 : vector<256x128xf32>
    %16 = arith.truncf %15 : vector<256x128xf32> to vector<256x128xbf16>
    %c0_12 = arith.constant 0 : index
    %c0_13 = arith.constant 0 : index
    %17 = vector.load %arg6[%c0_12, %c0_13] : memref<128x128xbf16, #tpu.memory_space<vmem>>, vector<128x128xbf16>
    %cst_14 = arith.constant dense<0.000000e+00> : vector<256x128xf32>
    %18 = tpu.matmul %16, %17, %cst_14 {dimension_numbers = #tpu.dot_dimension_numbers<[1], [0], [0], [1], [0, 0, 1, 1], [], []>} : vector<256x128xbf16>, vector<128x128xbf16>, vector<256x128xf32> -> vector<256x128xf32>
    %c0_15 = arith.constant 0 : index
    %c0_16 = arith.constant 0 : index
    %19 = vector.load %arg7[%c0_15, %c0_16] : memref<1x128xf32, #tpu.memory_space<vmem>>, vector<1x128xf32>
    %20 = vector.broadcast %19 : vector<1x128xf32> to vector<256x128xf32>
    %21 = arith.addf %18, %20 : vector<256x128xf32>
    %c0_17 = arith.constant 0 : index
    %c0_18 = arith.constant 0 : index
    %22 = vector.load %arg8[%c0_17, %c0_18] : memref<256x128xf32, #tpu.memory_space<vmem>>, vector<256x128xf32>
    tpu.vector_store %arg8[%c0_17, %c0_18], %21 {strides = array<i32>} : memref<256x128xf32, #tpu.memory_space<vmem>>, vector<256x128xf32>,
    return
  }
  func.func @transform_0(%arg0: i32) -> (i32, i32) {
    %c0_i32 = arith.constant 0 : i32
    %c0_i32_0 = arith.constant 0 : i32
    return %arg0, %c0_i32 : i32, i32
  }
  func.func @transform_1(%arg0: i32) -> (i32, i32) {
    %c0_i32 = arith.constant 0 : i32
    %c0_i32_0 = arith.constant 0 : i32
    %c0_i32_1 = arith.constant 0 : i32
    return %c0_i32, %c0_i32_0 : i32, i32
  }
  func.func @transform_2(%arg0: i32) -> (i32, i32) {
    %c0_i32 = arith.constant 0 : i32
    %c0_i32_0 = arith.constant 0 : i32
    %c0_i32_1 = arith.constant 0 : i32
    return %c0_i32, %c0_i32_0 : i32, i32
  }
  func.func @transform_3(%arg0: i32) -> (i32, i32) {
    %c0_i32 = arith.constant 0 : i32
    %c0_i32_0 = arith.constant 0 : i32
    %c0_i32_1 = arith.constant 0 : i32
    return %c0_i32, %c0_i32_0 : i32, i32
  }
  func.func @transform_4(%arg0: i32) -> (i32, i32) {
    %c0_i32 = arith.constant 0 : i32
    %c0_i32_0 = arith.constant 0 : i32
    %c0_i32_1 = arith.constant 0 : i32
    return %c0_i32, %c0_i32_0 : i32, i32
  }
  func.func @transform_5(%arg0: i32) -> (i32, i32) {
    %c0_i32 = arith.constant 0 : i32
    %c0_i32_0 = arith.constant 0 : i32
    %c0_i32_1 = arith.constant 0 : i32
    return %c0_i32, %c0_i32_0 : i32, i32
  }
  func.func @transform_6(%arg0: i32) -> (i32, i32) {
    %c0_i32 = arith.constant 0 : i32
    %c0_i32_0 = arith.constant 0 : i32
    %c0_i32_1 = arith.constant 0 : i32
    return %c0_i32, %c0_i32_0 : i32, i32
  }
  func.func @transform_7(%arg0: i32) -> (i32, i32) {
    %c0_i32 = arith.constant 0 : i32
    %c0_i32_0 = arith.constant 0 : i32
    return %arg0, %c0_i32 : i32, i32
  }
}

</mosaic_0001>

<bundles_post_ra>
// kernel: tpu_custom_call.1
= control target key start
LH: loop header
LB: loop body
LE: loop exit
PB: predicated region body
PF: predicated region fallthrough
CT: control target
= control target key end

     0   :  { %12 = vsyncpa [#allocation3], 0  ;;  %s6667_s0 = inlined_call_operand.vmem [shape: bf16[1280,1088], index: 0, kind: input, shape index: {}]   ;;  %s6668_s1 = inlined_call_operand.vmem [shape: bf16[1088,256], index: 1, kind: input, shape index: {}]   ;;  %s6669_s2 = inlined_call_operand.vmem [shape: f32[1,256], index: 2, kind: input, shape index: {}]   ;;  %s6670_s3 = inlined_call_operand.vmem [shape: bf16[256,128], index: 3, kind: input, shape index: {}]   ;;  %s6671_s4 = inlined_call_operand.vmem [shape: f32[1,128], index: 4, kind: input, shape index: {}]   ;;  %s6672_s5 = inlined_call_operand.vmem [shape: bf16[128,128], index: 5, kind: input, shape index: {}]   ;;  %s6673_s6 = inlined_call_operand.vmem [shape: f32[1,128], index: 6, kind: input, shape index: {}]   ;;  %s6674_s7 = inlined_call_operand.hbm [shape: f32[1280,128], index: 7, kind: output, shape index: {}]  }
   0x1   :  { %14 = vsyncpa [#allocation3 + $0x1], 0  ;;  %s5244_s24 = smov 0   ;;  %s5246_s25 = smov 0  }
   0x2   :  { %s5248_s26 = smov 0   ;;  %s5250_s27 = smov 0  }
   0x3 LB: > { %s5265_s28 = sadd.s32 4294967295, %s5198_s27   ;;  %s3786_s29 = sadd.s32 4294967294, %s5198_s27   ;;  %s5198_s27 = sphi %s5250_s27, %s6757_s27   ;;  %s5194_s26 = sphi %s5248_s26, %s6756_s26   ;;  %s5190_s25 = sphi %s5246_s25, %s6755_s25   ;;  %s5186_s24 = sphi %s5244_s24, %s6754_s24  }
   0x4   : > { %s5269_s30 = sadd.s32 1, %s5198_s27   ;;  %s179_s8 = sadd.s32 1, %s5194_s26 }
   0x5   : > { %s176_s9 = ssub.s32 %s5198_s27, %s5269_s30  ;;  %p189_p0 = scmp.ne.s32.totalorder %s5194_s26, %s5190_s25 }
   0x6   : > { %p177_p1 = scmp.eq.s32.totalorder %s176_s9, 0  ;;  %p190_p2 = scmp.eq.s32.totalorder %s5265_s28, 4 }
   0x7   : > { %p195_p3 = scmp.ne.s32.totalorder %s5190_s25, %s5186_s24  ;;  %p196_p4 = scmp.eq.s32.totalorder %s3786_s29, 4 }
   0x8   : > { %s5280_s10 = scalar_select %p177_p1, %s5194_s26, %s179_s8  }
   0x9   : > { %p5282_p5 = por %p190_p2, %p189_p0  ;;  %p5286_p6 = por %p196_p4, %p195_p3 }
   0xa   : > { %p3789_p7 = scmp.ge.s32.totalorder %s5198_s27, 1  ;;  %p242_p8 = scmp.lt.s32.totalorder %s5198_s27, 6 }
   0xc   : > { %p243_p9 = pnand %p3789_p7, %p242_p8 }
   0xe   : > { %246 = sbr.rel (%p243_p9) target bundleno = 1171 (0x493), region = 48 }
  0x15   : > { %v4700_v0 = vld [vmem:[%s6668_s1 + $0x104] ss:$8 sps:$4 sm:$0xff]   ;;  %v4702_v1 = vld [vmem:[%s6668_s1 + $0x100] ss:$8 sps:$4 sm:$0xff]   ;;  %v4703_v2 = vld [vmem:[%s6668_s1 + $0x114] ss:$8 sps:$4 sm:$0xff]  }
  0x16   : > { %2234 = vmatprep.subr.bf16.mxu0 %v4700_v0  ;;  %v4705_v3 = vld [vmem:[%s6668_s1 + $0x110] ss:$8 sps:$4 sm:$0xff]   ;;  %v4706_v4 = vld [vmem:[%s6668_s1 + $0x124] ss:$8 sps:$4 sm:$0xff]   ;;  %v4708_v5 = vld [vmem:[%s6668_s1 + $0x120] ss:$8 sps:$4 sm:$0xff]  }
  0x17   : > { %2235 = vmatpush1.bf16.msra.mxu0 %v4702_v1  ;;  %v4709_v6 = vld [vmem:[%s6668_s1 + $0x134] ss:$8 sps:$4 sm:$0xff]   ;;  %v4711_v7 = vld [vmem:[%s6668_s1 + $0x130] ss:$8 sps:$4 sm:$0xff]   ;;  %v4712_v8 = vld [vmem:[%s6668_s1 + $0x144] ss:$8 sps:$4 sm:$0xff]  }
  0x18   : > { %2236 = vmatprep.subr.bf16.mxu0 %v4703_v2  ;;  %v4727_v9 = vld [vmem:[%s6668_s1 + $0x4] ss:$8 sps:$4 sm:$0xff]   ;;  %v4729_v10 = vld [vmem:[%s6668_s1] ss:$8 sps:$4 sm:$0xff]   ;;  %v4733_v12 = vld [vmem:[%s6668_s1 + $0x14] ss:$8 sps:$4 sm:$0xff]  }
  0x19   : > { %v4714_v11 = vld [vmem:[%s6668_s1 + $0x140] ss:$8 sps:$4 sm:$0xff]   ;;  %2041 = vmatprep.subr.bf16.mxu1 %v4727_v9  ;;  %v4735_v13 = vld [vmem:[%s6668_s1 + $0x10] ss:$8 sps:$4 sm:$0xff]   ;;  %s3791_s13 = sshll.u32 %s5265_s28, 5  ;;  %vm1992_vm0 = vcmask 523264  }
  0x1a   : > { %2042 = vmatpush1.bf16.msra.mxu1 %v4729_v10  ;;  %v4715_v14 = vld [vmem:[%s6668_s1 + $0x154] ss:$8 sps:$4 sm:$0xff]   ;;  %v4717_v15 = vld [vmem:[%s6668_s1 + $0x150] ss:$8 sps:$4 sm:$0xff]   ;;  %v4739_v16 = vld [vmem:[%s6668_s1 + $0x24] ss:$8 sps:$4 sm:$0xff]  }
  0x1b   : > { %2237 = vmatpush1.bf16.msra.mxu0 %v4705_v3  ;;  %2043 = vmatprep.subr.bf16.mxu1 %v4733_v12  ;;  %p276_p10 = scmp.lt.s32.totalorder %s3791_s13, 159  ;;  %v4718_v17 = vld [vmem:[%s6668_s1 + $0x164] ss:$8 sps:$4 sm:$0xff]   ;;  %v4741_v18 = vld [vmem:[%s6668_s1 + $0x20] ss:$8 sps:$4 sm:$0xff]   ;;  %s272_s9 = sand.u32 1, %s5190_s25  }
  0x1c   : > { %2238 = vmatprep.subr.bf16.mxu0 %v4706_v4  ;;  %v4745_v19 = vld [vmem:[%s6668_s1 + $0x34] ss:$8 sps:$4 sm:$0xff]   ;;  %v4720_v20 = vld [vmem:[%s6668_s1 + $0x160] ss:$8 sps:$4 sm:$0xff]   ;;  %v4747_v22 = vld [vmem:[%s6668_s1 + $0x30] ss:$8 sps:$4 sm:$0xff]  }
  0x1d   : > { %s6759_s13 = smov (!%p276_p10, %s3791_s13), 159  ;;  %v4721_v21 = vld [vmem:[%s6668_s1 + $0x174] ss:$8 sps:$4 sm:$0xff]   ;;  %v4751_v23 = vld [vmem:[%s6668_s1 + $0x44] ss:$8 sps:$4 sm:$0xff]   ;;  %s3790_s14 = sshll.u32 %s272_s9, 8 }
  0x1e   : > { %2044 = vmatpush1.bf16.msra.mxu1 %v4735_v13  ;;  %v4723_v24 = vld [vmem:[%s6668_s1 + $0x170] ss:$8 sps:$4 sm:$0xff]   ;;  %s4657_s23 = smul.u32 36, %s6759_s13  ;;  %v4724_v25 = vld [vmem:[%s6668_s1 + $0x184] ss:$8 sps:$4 sm:$0xff]   ;;  %s6551_s16 = scalar_lea.vmem [#allocation2], %s3790_s14 }
  0x1f   : > { %2239 = vmatpush1.bf16.msra.mxu0 %v4708_v5  ;;  %2045 = vmatprep.subr.bf16.mxu1 %v4739_v16  ;;  %v4753_v26 = vld [vmem:[%s6668_s1 + $0x40] ss:$8 sps:$4 sm:$0xff]   ;;  %v4757_v27 = vld [vmem:[%s6668_s1 + $0x54] ss:$8 sps:$4 sm:$0xff]   ;;  %v4759_v30 = vld [vmem:[%s6668_s1 + $0x50] ss:$8 sps:$4 sm:$0xff]  }
  0x20   : > { %2240 = vmatprep.subr.bf16.mxu0 %v4709_v6  ;;  %v4726_v28 = vld [vmem:[%s6668_s1 + $0x180] ss:$8 sps:$4 sm:$0xff]   ;;  %s5383_s20 = scalar_lea.vmem %s6667_s0, %s4657_s23  ;;  %v4730_v29 = vld [vmem:[%s6668_s1 + $0x194] ss:$8 sps:$4 sm:$0xff]   ;;  %v4763_v31 = vld [vmem:[%s6668_s1 + $0x64] ss:$8 sps:$4 sm:$0xff]  }
  0x21   : > { %v4774_v32 = vld [vmem:[%s5383_s20 + $0xc] ss:$36 sps:$4 sm:$0xff]   ;;  %v4765_v35 = vld [vmem:[%s6668_s1 + $0x60] ss:$8 sps:$4 sm:$0xff]   ;;  %v4769_v36 = vld [vmem:[%s6668_s1 + $0x74] ss:$8 sps:$4 sm:$0xff]  }
  0x22   : > { %2046 = vmatpush1.bf16.msra.mxu1 %v4741_v18  ;;  %v4732_v33 = vld [vmem:[%s6668_s1 + $0x190] ss:$8 sps:$4 sm:$0xff]   ;;  %v4736_v34 = vld [vmem:[%s6668_s1 + $0x1a4] ss:$8 sps:$4 sm:$0xff]   ;;  %2266 = vmatprep.mubr.bf16.mxu0 %v4774_v32  ;;  %v4738_v37 = vld [vmem:[%s6668_s1 + $0x1a0] ss:$8 sps:$4 sm:$0xff]  }
  0x23   : > { %2241 = vmatpush1.bf16.msra.mxu0 %v4711_v7  ;;  %2047 = vmatprep.subr.bf16.mxu1 %v4745_v19  ;;  %v4742_v38 = vld [vmem:[%s6668_s1 + $0x1b4] ss:$8 sps:$4 sm:$0xff]   ;;  %v4771_v39 = vld [vmem:[%s6668_s1 + $0x70] ss:$8 sps:$4 sm:$0xff]   ;;  %v4778_v40 = vld [vmem:[%s6668_s1 + $0x84] ss:$8 sps:$4 sm:$0xff]  }
  0x24   : > { %2242 = vmatprep.subr.bf16.mxu0 %v4712_v8  ;;  %v4744_v41 = vld [vmem:[%s6668_s1 + $0x1b0] ss:$8 sps:$4 sm:$0xff]   ;;  %v4748_v42 = vld [vmem:[%s6668_s1 + $0x1c4] ss:$8 sps:$4 sm:$0xff]   ;;  %v4780_v43 = vld [vmem:[%s6668_s1 + $0x80] ss:$8 sps:$4 sm:$0xff]  }
  0x25   : > { %v4781_v44 = vld [vmem:[%s6668_s1 + $0x94] ss:$8 sps:$4 sm:$0xff]   ;;  %v4750_v45 = vld [vmem:[%s6668_s1 + $0x1c0] ss:$8 sps:$4 sm:$0xff]   ;;  %v4783_v47 = vld [vmem:[%s6668_s1 + $0x90] ss:$8 sps:$4 sm:$0xff]  }
  0x26   : > { %2048 = vmatpush1.bf16.msra.mxu1 %v4747_v22  ;;  %v4754_v46 = vld [vmem:[%s6668_s1 + $0x1d4] ss:$8 sps:$4 sm:$0xff]   ;;  %v4790_v48 = vld [vmem:[%s6668_s1 + $0xa4] ss:$8 sps:$4 sm:$0xff]   ;;  %v4756_v49 = vld [vmem:[%s6668_s1 + $0x1d0] ss:$8 sps:$4 sm:$0xff]  }
  0x27   : > { %2243 = vmatpush1.bf16.msra.mxu0 %v4714_v11  ;;  %2049 = vmatprep.subr.bf16.mxu1 %v4751_v23  ;;  %v4760_v50 = vld [vmem:[%s6668_s1 + $0x1e4] ss:$8 sps:$4 sm:$0xff]   ;;  %v4792_v51 = vld [vmem:[%s6668_s1 + $0xa0] ss:$8 sps:$4 sm:$0xff]   ;;  %v4793_v52 = vld [vmem:[%s6668_s1 + $0xb4] ss:$8 sps:$4 sm:$0xff]  }
  0x28   : > { %2244 = vmatprep.subr.bf16.mxu0 %v4715_v14  ;;  %v4762_v53 = vld [vmem:[%s6668_s1 + $0x1e0] ss:$8 sps:$4 sm:$0xff]   ;;  %v4766_v54 = vld [vmem:[%s6668_s1 + $0x1f4] ss:$8 sps:$4 sm:$0xff]   ;;  %v4795_v55 = vld [vmem:[%s6668_s1 + $0xb0] ss:$8 sps:$4 sm:$0xff]  }
  0x29   : > { %v4802_v56 = vld [vmem:[%s6668_s1 + $0xc4] ss:$8 sps:$4 sm:$0xff]   ;;  %v4768_v58 = vld [vmem:[%s6668_s1 + $0x1f0] ss:$8 sps:$4 sm:$0xff]   ;;  %v4804_v60 = vld [vmem:[%s6668_s1 + $0xc0] ss:$8 sps:$4 sm:$0xff]  }
  0x2a   : > { %2050 = vmatpush1.bf16.msra.mxu1 %v4753_v26  ;;  %v4828_v57 = vld [vmem:[%s5383_s20 + $0x4] ss:$36 sps:$4 sm:$0xff]   ;;  %v4805_v61 = vld [vmem:[%s6668_s1 + $0xd4] ss:$8 sps:$4 sm:$0xff]   ;;  %v4807_v2 = vld [vmem:[%s6668_s1 + $0xd0] ss:$8 sps:$4 sm:$0xff]  }
  0x2b   : > { %2245 = vmatpush1.bf16.msra.mxu0 %v4717_v15  ;;  %2051 = vmatprep.subr.bf16.mxu1 %v4757_v27  ;;  %v4777_v59 = vld [vmem:[%s6668_s1 + $0x204] ss:$8 sps:$4 sm:$0xff]   ;;  %v4775_v63 = vld [vmem:[%s6668_s1 + $0x200] ss:$8 sps:$4 sm:$0xff]   ;;  %v4784_v0 = vld [vmem:[%s5383_s20 + $0x54] ss:$36 sps:$4 sm:$0xff]  }
  0x2c   : > { %2246 = vmatprep.subr.bf16.mxu0 %v4718_v17  ;;  %2073 = vmatprep.mubr.bf16.mxu1 %v4828_v57  ;;  %v4772_v62 = vld [vmem:[%s5383_s20 + $0x8] ss:$36 sps:$4 sm:$0xff]   ;;  %v4789_v1 = vld [vmem:[%s6668_s1 + $0x214] ss:$8 sps:$4 sm:$0xff]   ;;  %v4787_v4 = vld [vmem:[%s6668_s1 + $0x210] ss:$8 sps:$4 sm:$0xff]  }
  0x2d   : > { %v4814_v3 = vld [vmem:[%s6668_s1 + $0xe4] ss:$8 sps:$4 sm:$0xff]   ;;  %v4816_v6 = vld [vmem:[%s6668_s1 + $0xe0] ss:$8 sps:$4 sm:$0xff]   ;;  %v4817_v7 = vld [vmem:[%s6668_s1 + $0xf4] ss:$8 sps:$4 sm:$0xff]  }
  0x2e   : > { %2052 = vmatpush1.bf16.msra.mxu1 %v4759_v30  ;;  %v4801_v5 = vld [vmem:[%s6668_s1 + $0x224] ss:$8 sps:$4 sm:$0xff]   ;;  %v4786_v8 = vld [vmem:[%s5383_s20 + $0x50] ss:$36 sps:$4 sm:$0xff]   ;;  %v4796_v9 = vld [vmem:[%s5383_s20 + $0x9c] ss:$36 sps:$4 sm:$0xff]  }
  0x2f   : > { %2247 = vmatpush1.bf16.msra.mxu0 %v4720_v20  ;;  %2053 = vmatprep.subr.bf16.mxu1 %v4763_v31  ;;  %v4799_v10 = vld [vmem:[%s6668_s1 + $0x220] ss:$8 sps:$4 sm:$0xff]   ;;  %v4813_v11 = vld [vmem:[%s6668_s1 + $0x234] ss:$8 sps:$4 sm:$0xff]   ;;  %v4819_v12 = vld [vmem:[%s6668_s1 + $0xf0] ss:$8 sps:$4 sm:$0xff]  }
  0x30   : > { %2248 = vmatprep.subr.bf16.mxu0 %v4721_v21  ;;  %v4811_v13 = vld [vmem:[%s6668_s1 + $0x230] ss:$8 sps:$4 sm:$0xff]   ;;  %v4825_v14 = vld [vmem:[%s6668_s1 + $0x244] ss:$8 sps:$4 sm:$0xff]   ;;  %v4823_v19 = vld [vmem:[%s6668_s1 + $0x240] ss:$8 sps:$4 sm:$0xff]  }
  0x31   : > { %v4826_v15 = vld [vmem:[%s5383_s20] ss:$36 sps:$4 sm:$0xff]   ;;  %v4835_v16 = vld [vmem:[%s5383_s20 + $0x4c] ss:$36 sps:$4 sm:$0xff]   ;;  %v4798_v17 = vld [vmem:[%s5383_s20 + $0x98] ss:$36 sps:$4 sm:$0xff]  }
  0x32   : > { %2054 = vmatpush1.bf16.msra.mxu1 %v4765_v35  ;;  %v4808_v18 = vld [vmem:[%s5383_s20 + $0xe4] ss:$36 sps:$4 sm:$0xff]   ;;  %v4834_v20 = vld [vmem:[%s6668_s1 + $0x254] ss:$8 sps:$4 sm:$0xff]   ;;  %v4832_v21 = vld [vmem:[%s6668_s1 + $0x250] ss:$8 sps:$4 sm:$0xff]  }
  0x33   : > { %2249 = vmatpush1.bf16.msra.mxu0 %v4723_v24  ;;  %2055 = vmatprep.subr.bf16.mxu1 %v4769_v36  ;;  %v4837_v22 = vld [vmem:[%s5383_s20 + $0x48] ss:$36 sps:$4 sm:$0xff]   ;;  %v4844_v24 = vld [vmem:[%s5383_s20 + $0x94] ss:$36 sps:$4 sm:$0xff]   ;;  %s4120_s17 = sshll.u32 %s5265_s28, 12  ;;  %s3724_s18 = sshll.u32 %s6551_s16, 4  ;;  %s6618_s18 = int_to_ptr.vmem [resolvable:$true] %s3724_s18 }
  0x34   : > { %2250 = vmatprep.subr.bf16.mxu0 %v4724_v25  ;;  %v4843_v23 = vld [vmem:[%s6668_s1 + $0x264] ss:$8 sps:$4 sm:$0xff]   ;;  %v4841_v27 = vld [vmem:[%s6668_s1 + $0x260] ss:$8 sps:$4 sm:$0xff]   ;;  %v4850_v30 = vld [vmem:[%s6668_s1 + $0x270] ss:$8 sps:$4 sm:$0xff]   ;;  %s6616_s21 = scalar_lea.hbm %s6674_s7, %s4120_s17 }
  0x35   : > { %v4810_v25 = vld [vmem:[%s5383_s20 + $0xe0] ss:$36 sps:$4 sm:$0xff]   ;;  %v4820_v26 = vld [vmem:[%s5383_s20 + $0x12c] ss:$36 sps:$4 sm:$0xff]   ;;  %s6626_s28 = scalar_lea.sflag [#allocation3], %s272_s9  ;;  %s5201_s22 = smov [#allocation2]  }
  0x36   : > { %2056 = vmatpush1.bf16.msra.mxu1 %v4771_v39  ;;  %v5556_v31 = vld [vmem:[%s6668_s1 + $0x300] ss:$8 sps:$4 sm:$0xff]   ;;  %v5561_v32 = vld [vmem:[%s6668_s1 + $0x304] ss:$8 sps:$4 sm:$0xff]   ;;  %v5577_v36 = vld [vmem:[%s6668_s1 + $0x310] ss:$8 sps:$4 sm:$0xff]  }
  0x37   : > { %2251 = vmatpush1.bf16.msra.mxu0 %v4726_v28  ;;  %2057 = vmatprep.subr.bf16.mxu1 %v4778_v40  ;;  %v4852_v28 = vld [vmem:[%s6668_s1 + $0x274] ss:$8 sps:$4 sm:$0xff]   ;;  %v4861_v35 = vld [vmem:[%s6668_s1 + $0x284] ss:$8 sps:$4 sm:$0xff]   ;;  %v4859_v39 = vld [vmem:[%s6668_s1 + $0x280] ss:$8 sps:$4 sm:$0xff]  }
  0x38   : > { %2252 = vmatprep.subr.bf16.mxu0 %v4730_v29  ;;  %v4846_v29 = vld [vmem:[%s5383_s20 + $0x90] ss:$36 sps:$4 sm:$0xff]   ;;  %s5140_s29 = sshll.u32 %s5201_s22, 4  ;;  %s5141_s29 = int_to_ptr.vmem [resolvable:$false] %s5140_s29 }
  0x39   : > { %v4870_v40 = vld [vmem:[%s6668_s1 + $0x294] ss:$8 sps:$4 sm:$0xff]   ;;  %v4871_v57 = vld [vmem:[%s5383_s20 + $0x16c] ss:$36 sps:$4 sm:$0xff]   ;;  %s5142_s8 = scalar_lea.vmem %s5141_s29, 8192  ;;  %p5143_p0 = scmp.lt.s32.totalorder %s6618_s18, %s5141_s29 }
  0x3a   : > { %2058 = vmatpush1.bf16.msra.mxu1 %v4780_v43  ;;  %v4855_v43 = vld [vmem:[%s5383_s20 + $0xd8] ss:$36 sps:$4 sm:$0xff]  }
  0x3b   : > { %2253 = vmatpush1.bf16.msra.mxu0 %v4732_v33  ;;  %2059 = vmatprep.subr.bf16.mxu1 %v4781_v44  ;;  %v4853_v33 = vld [vmem:[%s5383_s20 + $0xdc] ss:$36 sps:$4 sm:$0xff]  }
  0x3c   : > { %2254 = vmatprep.subr.bf16.mxu0 %v4736_v34  ;;  %v5567_v34 = vld [vmem:[%s6668_s1 + $0x314] ss:$8 sps:$4 sm:$0xff]  }
  0x3d   : > { %v5603_v44 = vld [vmem:[%s6668_s1 + $0x334] ss:$8 sps:$4 sm:$0xff]  }
  0x3e   : > { %2060 = vmatpush1.bf16.msra.mxu1 %v4783_v47  ;;  %v4879_v47 = vld [vmem:[%s6668_s1 + $0x2a4] ss:$8 sps:$4 sm:$0xff]  }
  0x3f   : > { %2255 = vmatpush1.bf16.msra.mxu0 %v4738_v37  ;;  %2061 = vmatprep.subr.bf16.mxu1 %v4790_v48  ;;  %v4822_v37 = vld [vmem:[%s5383_s20 + $0x128] ss:$36 sps:$4 sm:$0xff]   ;;  %v5617_v48 = vld [vmem:[%s6668_s1 + $0x330] ss:$8 sps:$4 sm:$0xff]  }
  0x40   : > { %2256 = vmatprep.subr.bf16.mxu0 %v4742_v38  ;;  %v4829_v38 = vld [vmem:[%s5383_s20 + $0x174] ss:$36 sps:$4 sm:$0xff]  }
  0x42   : > { %2062 = vmatpush1.bf16.msra.mxu1 %v4792_v51  ;;  %v4877_v51 = vld [vmem:[%s6668_s1 + $0x2a0] ss:$8 sps:$4 sm:$0xff]  }
  0x43   : > { %2257 = vmatpush1.bf16.msra.mxu0 %v4744_v41  ;;  %2063 = vmatprep.subr.bf16.mxu1 %v4793_v52  ;;  %v5591_v41 = vld [vmem:[%s6668_s1 + $0x320] ss:$8 sps:$4 sm:$0xff]   ;;  %v5628_v52 = vld [vmem:[%s6668_s1 + $0x344] ss:$8 sps:$4 sm:$0xff]  }
  0x44   : > { %2258 = vmatprep.subr.bf16.mxu0 %v4748_v42  ;;  %v5597_v42 = vld [vmem:[%s6668_s1 + $0x324] ss:$8 sps:$4 sm:$0xff]  }
  0x46   : > { %2064 = vmatpush1.bf16.msra.mxu1 %v4795_v55  ;;  %v4864_v55 = vld [vmem:[%s5383_s20 + $0x120] ss:$36 sps:$4 sm:$0xff]  }
  0x47   : > { %2259 = vmatpush1.bf16.msra.mxu0 %v4750_v45  ;;  %2065 = vmatprep.subr.bf16.mxu1 %v4802_v56  ;;  %v4862_v45 = vld [vmem:[%s5383_s20 + $0x124] ss:$36 sps:$4 sm:$0xff]   ;;  %v5644_v56 = vld [vmem:[%s6668_s1 + $0x354] ss:$8 sps:$4 sm:$0xff]  }
  0x48   : > { %2260 = vmatprep.subr.bf16.mxu0 %v4754_v46  ;;  %v4868_v46 = vld [vmem:[%s6668_s1 + $0x290] ss:$8 sps:$4 sm:$0xff]  }
  0x4a   : > { %2066 = vmatpush1.bf16.msra.mxu1 %v4804_v60  ;;  %v5657_v60 = vld [vmem:[%s6668_s1 + $0x350] ss:$8 sps:$4 sm:$0xff]  }
  0x4b   : > { %2261 = vmatpush1.bf16.msra.mxu0 %v4756_v49  ;;  %2067 = vmatprep.subr.bf16.mxu1 %v4805_v61  ;;  %v4831_v49 = vld [vmem:[%s5383_s20 + $0x170] ss:$36 sps:$4 sm:$0xff]   ;;  %v4840_v61 = vld [vmem:[%s5383_s20 + $0x1b8] ss:$36 sps:$4 sm:$0xff]  }
  0x4c   : > { %2262 = vmatprep.subr.bf16.mxu0 %v4760_v50  ;;  %v4838_v50 = vld [vmem:[%s5383_s20 + $0x1bc] ss:$36 sps:$4 sm:$0xff]  }
  0x4e   : > { %2068 = vmatpush1.bf16.msra.mxu1 %v4807_v2  ;;  %v5677_v2 = vld [vmem:[%s6668_s1 + $0x360] ss:$8 sps:$4 sm:$0xff]  }
  0x4f   : > { %2263 = vmatpush1.bf16.msra.mxu0 %v4762_v53  ;;  %2069 = vmatprep.subr.bf16.mxu1 %v4814_v3  ;;  %v4888_v53 = vld [vmem:[%s6668_s1 + $0x2b4] ss:$8 sps:$4 sm:$0xff]   ;;  %v4873_v3 = vld [vmem:[%s5383_s20 + $0x168] ss:$36 sps:$4 sm:$0xff]  }
  0x50   : > { %2264 = vmatprep.subr.bf16.mxu0 %v4766_v54  ;;  %v5637_v54 = vld [vmem:[%s6668_s1 + $0x340] ss:$8 sps:$4 sm:$0xff]  }
  0x52   : > { %2070 = vmatpush1.bf16.msra.mxu1 %v4816_v6  ;;  %v4910_v6 = vld [vmem:[%s6668_s1 + $0x2d0] ss:$8 sps:$4 sm:$0xff]  }
  0x53   : > { %2265 = vmatpush1.bf16.msra.mxu0 %v4768_v58  ;;  %2071 = vmatprep.subr.bf16.mxu1 %v4817_v7  ;;  %v4886_v58 = vld [vmem:[%s6668_s1 + $0x2b0] ss:$8 sps:$4 sm:$0xff]   ;;  %v4927_v7 = vld [vmem:[%s6668_s1 + $0x2e4] ss:$8 sps:$4 sm:$0xff]  }
  0x54   : > { %2427 = vmatprep.subr.bf16.mxu0 %v4777_v59  ;;  %v4897_v59 = vld [vmem:[%s6668_s1 + $0x2c4] ss:$8 sps:$4 sm:$0xff]  }
  0x56   : > { %2267 = vmatmul.mubr.bf16.vlgmr.msra.gmra.mrb[0].mxu0 %v4772_v62  ;;  %2072 = vmatpush1.bf16.msra.mxu1 %v4819_v12  ;;  %v5664_v62 = vld [vmem:[%s6668_s1 + $0x364] ss:$8 sps:$4 sm:$0xff]   ;;  %v4925_v12 = vld [vmem:[%s6668_s1 + $0x2e0] ss:$8 sps:$4 sm:$0xff]  }
  0x57   : > { %2428 = vmatpush1.bf16.msra.mxu0 %v4775_v63  ;;  %2276 = vmatprep.mubr.bf16.mxu0 %v4784_v0  ;;  %v4847_v63 = vld [vmem:[%s5383_s20 + $0x204] ss:$36 sps:$4 sm:$0xff]  }
  0x58   : > { %2429 = vmatprep.subr.bf16.mxu0 %v4789_v1  ;;  %4305 = vmatprep.subr.bf16.mxu1 %v5561_v32  ;;  %v4895_v0 = vld [vmem:[%s6668_s1 + $0x2c0] ss:$8 sps:$4 sm:$0xff]   ;;  %v4912_v1 = vld [vmem:[%s6668_s1 + $0x2d4] ss:$8 sps:$4 sm:$0xff]  }
  0x59   : > { %2074 = vmatmul.mubr.bf16.vlgmr.msra.gmra.mrb[0].mxu1 %v4826_v15  ;;  %v5723_v15 = vld [vmem:[%s6668_s1 + $0x394] ss:$8 sps:$4 sm:$0xff]  }
  0x5a   : > { %2083 = vmatprep.mubr.bf16.mxu1 %v4835_v16  ;;  %4321 = vmatpush1.bf16.msra.mxu1 %v5556_v31  ;;  %v4882_v16 = vld [vmem:[%s5383_s20 + $0x1b0] ss:$36 sps:$4 sm:$0xff]  }
  0x5b   : > { %2430 = vmatpush1.bf16.msra.mxu0 %v4787_v4  ;;  %4306 = vmatprep.subr.bf16.mxu1 %v5567_v34  ;;  %v5684_v4 = vld [vmem:[%s6668_s1 + $0x374] ss:$8 sps:$4 sm:$0xff]  }
  0x5c   : > { %2431 = vmatprep.subr.bf16.mxu0 %v4801_v5  ;;  %v4880_v5 = vld [vmem:[%s5383_s20 + $0x1b4] ss:$36 sps:$4 sm:$0xff]  }
  0x5e   : > { %2277 = vmatmul.mubr.bf16.gmra.mrb[4].mxu0 %v4786_v8  ;;  %4322 = vmatpush1.bf16.msra.mxu1 %v5577_v36  ;;  %v5697_v8 = vld [vmem:[%s6668_s1 + $0x370] ss:$8 sps:$4 sm:$0xff]  }
  0x5f   : > { %2286 = vmatprep.mubr.bf16.mxu0 %v4796_v9  ;;  %2432 = vmatpush1.bf16.msra.mxu0 %v4799_v10  ;;  %v4849_v9 = vld [vmem:[%s5383_s20 + $0x200] ss:$36 sps:$4 sm:$0xff]  }
  0x60   : > { %2433 = vmatprep.subr.bf16.mxu0 %v4813_v11  ;;  %4307 = vmatprep.subr.bf16.mxu1 %v5597_v42  ;;  %v5704_v10 = vld [vmem:[%s6668_s1 + $0x384] ss:$8 sps:$4 sm:$0xff]  }
  0x61   : > { %2084 = vmatmul.mubr.bf16.gmra.mrb[4].mxu1 %v4837_v22  ;;  %v4856_v11 = vld [vmem:[%s5383_s20 + $0x24c] ss:$36 sps:$4 sm:$0xff]   ;;  %v4865_v22 = vld [vmem:[%s5383_s20 + $0x294] ss:$36 sps:$4 sm:$0xff]  }
  0x62   : > { %2093 = vmatprep.mubr.bf16.mxu1 %v4844_v24  ;;  %4323 = vmatpush1.bf16.msra.mxu1 %v5591_v41  ;;  %v5755_v24 = vld [vmem:[%s6668_s1 + $0x3b4] ss:$8 sps:$4 sm:$0xff]  }
  0x63   : > { %2434 = vmatpush1.bf16.msra.mxu0 %v4811_v13  ;;  %4308 = vmatprep.subr.bf16.mxu1 %v5603_v44  ;;  %v4942_v13 = vld [vmem:[%s6668_s1 + $0x2f4] ss:$8 sps:$4 sm:$0xff]  }
  0x64   : > { %2435 = vmatprep.subr.bf16.mxu0 %v4825_v14  ;;  %v5717_v14 = vld [vmem:[%s6668_s1 + $0x380] ss:$8 sps:$4 sm:$0xff]  }
  0x66   : > { %2287 = vmatmul.mubr.bf16.gmra.mrb[8].mxu0 %v4798_v17  ;;  %4324 = vmatpush1.bf16.msra.mxu1 %v5617_v48  ;;  %v4940_v17 = vld [vmem:[%s6668_s1 + $0x2f0] ss:$8 sps:$4 sm:$0xff]  }
  0x67   : > { %2296 = vmatprep.mubr.bf16.mxu0 %v4808_v18  ;;  %2436 = vmatpush1.bf16.msra.mxu0 %v4823_v19  ;;  %v4889_v18 = vld [vmem:[%s5383_s20 + $0x1fc] ss:$36 sps:$4 sm:$0xff]   ;;  %v5734_v19 = vld [vmem:[%s6668_s1 + $0x390] ss:$8 sps:$4 sm:$0xff]  }
  0x68   : > { %2437 = vmatprep.subr.bf16.mxu0 %v4834_v20  ;;  %4309 = vmatprep.subr.bf16.mxu1 %v5628_v52  ;;  %v4858_v20 = vld [vmem:[%s5383_s20 + $0x248] ss:$36 sps:$4 sm:$0xff]  }
  0x69   : > { %2094 = vmatmul.mubr.bf16.gmra.mrb[8].mxu1 %v4846_v29  ;;  %v5770_v29 = vld [vmem:[%s6668_s1 + $0x3c4] ss:$8 sps:$4 sm:$0xff]  }
  0x6a   : > { %2103 = vmatprep.mubr.bf16.mxu1 %v4853_v33  ;;  %4325 = vmatpush1.bf16.msra.mxu1 %v5637_v54  ;;  %v5783_v33 = vld [vmem:[%s6668_s1 + $0x3d4] ss:$8 sps:$4 sm:$0xff]  }
  0x6b   : > { %2438 = vmatpush1.bf16.msra.mxu0 %v4832_v21  ;;  %4310 = vmatprep.subr.bf16.mxu1 %v5644_v56  ;;  %v5741_v21 = vld [vmem:[%s6668_s1 + $0x3a4] ss:$8 sps:$4 sm:$0xff]  }
  0x6c   : > { %2439 = vmatprep.subr.bf16.mxu0 %v4843_v23  ;;  %v5749_v23 = vld [vmem:[%s6668_s1 + $0x3a0] ss:$8 sps:$4 sm:$0xff]  }
  0x6e   : > { %2297 = vmatmul.mubr.bf16.gmra.mrb[12].mxu0 %v4810_v25  ;;  %4326 = vmatpush1.bf16.msra.mxu1 %v5657_v60  ;;  %v4891_v25 = vld [vmem:[%s5383_s20 + $0x1f8] ss:$36 sps:$4 sm:$0xff]  }
  0x6f   : > { %2306 = vmatprep.mubr.bf16.mxu0 %v4820_v26  ;;  %2440 = vmatpush1.bf16.msra.mxu0 %v4841_v27  ;;  %v4898_v26 = vld [vmem:[%s5383_s20 + $0x244] ss:$36 sps:$4 sm:$0xff]   ;;  %v5763_v27 = vld [vmem:[%s6668_s1 + $0x3b0] ss:$8 sps:$4 sm:$0xff]  }
  0x70   : > { %2441 = vmatprep.subr.bf16.mxu0 %v4852_v28  ;;  %4311 = vmatprep.subr.bf16.mxu1 %v5664_v62  ;;  %v4867_v28 = vld [vmem:[%s5383_s20 + $0x290] ss:$36 sps:$4 sm:$0xff]  }
  0x71   : > { %2104 = vmatmul.mubr.bf16.gmra.mrb[12].mxu1 %v4855_v43  ;;  %v4883_v43 = vld [vmem:[%s5383_s20 + $0x324] ss:$36 sps:$4 sm:$0xff]  }
  0x72   : > { %2113 = vmatprep.mubr.bf16.mxu1 %v4862_v45  ;;  %4327 = vmatpush1.bf16.msra.mxu1 %v5677_v2  ;;  %v5805_v45 = vld [vmem:[%s6668_s1 + $0x3e0] ss:$8 sps:$4 sm:$0xff]  }
  0x73   : > { %2442 = vmatpush1.bf16.msra.mxu0 %v4850_v30  ;;  %4312 = vmatprep.subr.bf16.mxu1 %v5684_v4  ;;  %v4874_v30 = vld [vmem:[%s5383_s20 + $0x2dc] ss:$36 sps:$4 sm:$0xff]  }
  0x74   : > { %2443 = vmatprep.subr.bf16.mxu0 %v4861_v35  ;;  %v4900_v35 = vld [vmem:[%s5383_s20 + $0x240] ss:$36 sps:$4 sm:$0xff]  }
  0x76   : > { %2307 = vmatmul.mubr.bf16.gmra.mrb[16].mxu0 %v4822_v37  ;;  %4328 = vmatpush1.bf16.msra.mxu1 %v5697_v8  ;;  %v4913_v37 = vld [vmem:[%s5383_s20 + $0x28c] ss:$36 sps:$4 sm:$0xff]  }
  0x77   : > { %2316 = vmatprep.mubr.bf16.mxu0 %v4829_v38  ;;  %2444 = vmatpush1.bf16.msra.mxu0 %v4859_v39  ;;  %v5791_v38 = vld [vmem:[%s6668_s1 + $0x3d0] ss:$8 sps:$4 sm:$0xff]  }
  0x78   : > { %2445 = vmatprep.subr.bf16.mxu0 %v4870_v40  ;;  %4313 = vmatprep.subr.bf16.mxu1 %v5704_v10  ;;  %v4876_v39 = vld [vmem:[%s5383_s20 + $0x2d8] ss:$36 sps:$4 sm:$0xff]   ;;  %v5798_v40 = vld [vmem:[%s6668_s1 + $0x3e4] ss:$8 sps:$4 sm:$0xff]  }
  0x79   : > { %2114 = vmatmul.mubr.bf16.gmra.mrb[16].mxu1 %v4864_v55  ;;  %v4930_v55 = vld [vmem:[%s5383_s20 + $0x2d0] ss:$36 sps:$4 sm:$0xff]  }
  0x7a   : > { %2123 = vmatprep.mubr.bf16.mxu1 %v4871_v57  ;;  %4329 = vmatpush1.bf16.msra.mxu1 %v5717_v14  ;;  %v4943_v57 = vld [vmem:[%s5383_s20 + $0x31c] ss:$36 sps:$4 sm:$0xff]  }
  0x7b   : > { %2446 = vmatpush1.bf16.msra.mxu0 %v4868_v46  ;;  %4314 = vmatprep.subr.bf16.mxu1 %v5723_v15  ;;  %v5811_v46 = vld [vmem:[%s6668_s1 + $0x3f4] ss:$8 sps:$4 sm:$0xff]  }
  0x7c   : > { %2447 = vmatprep.subr.bf16.mxu0 %v4879_v47  ;;  %v4915_v47 = vld [vmem:[%s5383_s20 + $0x288] ss:$36 sps:$4 sm:$0xff]  }
  0x7e   : > { %2317 = vmatmul.mubr.bf16.gmra.mrb[20].mxu0 %v4831_v49  ;;  %4330 = vmatpush1.bf16.msra.mxu1 %v5734_v19  ;;  %v4928_v49 = vld [vmem:[%s5383_s20 + $0x2d4] ss:$36 sps:$4 sm:$0xff]  }
  0x7f   : > { %2326 = vmatprep.mubr.bf16.mxu0 %v4838_v50  ;;  %2448 = vmatpush1.bf16.msra.mxu0 %v4877_v51  ;;  %v5819_v50 = vld [vmem:[%s6668_s1 + $0x3f0] ss:$8 sps:$4 sm:$0xff]   ;;  %v4885_v51 = vld [vmem:[%s5383_s20 + $0x320] ss:$36 sps:$4 sm:$0xff]  }
  0x80   : > { %2449 = vmatprep.subr.bf16.mxu0 %v4888_v53  ;;  %4315 = vmatprep.subr.bf16.mxu1 %v5741_v21  ;;  %v4892_v53 = vld [vmem:[%s5383_s20 + $0x36c] ss:$36 sps:$4 sm:$0xff]  }
  0x81   : > { %2124 = vmatmul.mubr.bf16.gmra.mrb[20].mxu1 %v4873_v3  ;;  %v4957_v3 = vld [vmem:[%s5383_s20 + $0x360] ss:$36 sps:$4 sm:$0xff]  }
  0x82   : > { %2133 = vmatprep.mubr.bf16.mxu1 %v4880_v5  ;;  %4331 = vmatpush1.bf16.msra.mxu1 %v5749_v23  ;;  %v4967_v5 = vld [vmem:[%s5383_s20 + $0x3ac] ss:$36 sps:$4 sm:$0xff]  }
  0x83   : > { %2450 = vmatpush1.bf16.msra.mxu0 %v4886_v58  ;;  %4316 = vmatprep.subr.bf16.mxu1 %v5755_v24  ;;  %v4894_v58 = vld [vmem:[%s5383_s20 + $0x368] ss:$36 sps:$4 sm:$0xff]  }
  0x84   : > { %2451 = vmatprep.subr.bf16.mxu0 %v4897_v59  ;;  %v4907_v59 = vld [vmem:[%s5383_s20 + $0x3b4] ss:$36 sps:$4 sm:$0xff]  }
  0x86   : > { %2327 = vmatmul.mubr.bf16.gmra.mrb[24].mxu0 %v4840_v61  ;;  %4332 = vmatpush1.bf16.msra.mxu1 %v5763_v27  ;;  %v4945_v61 = vld [vmem:[%s5383_s20 + $0x318] ss:$36 sps:$4 sm:$0xff]  }
  0x87   : > { %2336 = vmatprep.mubr.bf16.mxu0 %v4847_v63  ;;  %2452 = vmatpush1.bf16.msra.mxu0 %v4895_v0  ;;  %v4955_v63 = vld [vmem:[%s5383_s20 + $0x364] ss:$36 sps:$4 sm:$0xff]   ;;  %v4909_v0 = vld [vmem:[%s5383_s20 + $0x3b0] ss:$36 sps:$4 sm:$0xff]  }
  0x88   : > { %2453 = vmatprep.subr.bf16.mxu0 %v4912_v1  ;;  %4317 = vmatprep.subr.bf16.mxu1 %v5770_v29  ;;  %v4922_v1 = vld [vmem:[%s5383_s20 + $0x3fc] ss:$36 sps:$4 sm:$0xff]  }
  0x89   : > { %2134 = vmatmul.mubr.bf16.gmra.mrb[24].mxu1 %v4882_v16  ;;  %v4981_v16 = vld [vmem:[%s5383_s20 + $0x3f0] ss:$36 sps:$4 sm:$0xff]  }
  0x8a   : > { %2143 = vmatprep.mubr.bf16.mxu1 %v4889_v18  ;;  %v4952_v18 = vld [vmem:[%s5383_s20 + $0x10] ss:$36 sps:$4 sm:$0xff]  }
  0x8b   : > { %2454 = vmatpush1.bf16.msra.mxu0 %v4910_v6  ;;  %v4924_v6 = vld [vmem:[%s5383_s20 + $0x3f8] ss:$36 sps:$4 sm:$0xff]  }
  0x8c   : > { %2455 = vmatprep.subr.bf16.mxu0 %v4927_v7  ;;  %v4937_v7 = vld [vmem:[%s5383_s20 + $0x444] ss:$36 sps:$4 sm:$0xff]  }
  0x8e   : > { %2337 = vmatmul.mubr.bf16.gmra.mrb[28].mxu0 %v4849_v9  ;;  %v4969_v9 = vld [vmem:[%s5383_s20 + $0x3a8] ss:$36 sps:$4 sm:$0xff]  }
  0x8f   : > { %2346 = vmatprep.mubr.bf16.mxu0 %v4856_v11  ;;  %2456 = vmatpush1.bf16.msra.mxu0 %v4925_v12  ;;  %v4979_v11 = vld [vmem:[%s5383_s20 + $0x3f4] ss:$36 sps:$4 sm:$0xff]   ;;  %v4939_v12 = vld [vmem:[%s5383_s20 + $0x440] ss:$36 sps:$4 sm:$0xff]  }
  0x90   : > { %2457 = vmatprep.subr.bf16.mxu0 %v4942_v13  ;;  %v4954_v13 = vld [vmem:[%s5383_s20 + $0x14] ss:$36 sps:$4 sm:$0xff]  }
  0x91   : > { %2144 = vmatmul.mubr.bf16.gmra.mrb[28].mxu1 %v4891_v25  ;;  %v5005_v25 = vld [vmem:[%s5383_s20 + $0x13c] ss:$36 sps:$4 sm:$0xff]  }
  0x92   : > { %2153 = vmatprep.mubr.bf16.mxu1 %v4898_v26  ;;  %v4966_v26 = vld [vmem:[%s5383_s20 + $0x58] ss:$36 sps:$4 sm:$0xff]  }
  0x93   : > { %2458 = vmatpush1.bf16.msra.mxu0 %v4940_v17  ;;  %v4991_v17 = vld [vmem:[%s5383_s20 + $0x43c] ss:$36 sps:$4 sm:$0xff]  }
  0x94   : > { %2620 = vmatprep.subr.bf16.mxu0 %v5561_v32  ;;  %v5777_v32 = vld [vmem:[%s6668_s1 + $0x3c0] ss:$8 sps:$4 sm:$0xff]  }
  0x95   : > { %4333 = vmatpush1.bf16.msra.mxu1 %v5777_v32 }
  0x96   : > { %2347 = vmatmul.mubr.bf16.gmra.mrb[32].mxu0 %v4858_v20  ;;  %4318 = vmatprep.subr.bf16.mxu1 %v5783_v33  ;;  %v4964_v20 = vld [vmem:[%s5383_s20 + $0x5c] ss:$36 sps:$4 sm:$0xff]  }
  0x97   : > { %2356 = vmatprep.mubr.bf16.mxu0 %v4865_v22  ;;  %v4993_v22 = vld [vmem:[%s5383_s20 + $0x438] ss:$36 sps:$4 sm:$0xff]  }
  0x99   : > { %2154 = vmatmul.mubr.bf16.gmra.mrb[32].mxu1 %v4900_v35  ;;  %v4988_v35 = vld [vmem:[%s5383_s20 + $0xec] ss:$36 sps:$4 sm:$0xff]  }
  0x9a   : > { %2163 = vmatprep.mubr.bf16.mxu1 %v4913_v37  ;;  %4334 = vmatpush1.bf16.msra.mxu1 %v5791_v38  ;;  %v5030_v37 = vld [vmem:[%s5383_s20 + $0x29c] ss:$36 sps:$4 sm:$0xff]  }
  0x9b   : > { %4319 = vmatprep.subr.bf16.mxu1 %v5798_v40 }
  0x9e   : > { %2357 = vmatmul.mubr.bf16.gmra.mrb[36].mxu0 %v4867_v28  ;;  %4335 = vmatpush1.bf16.msra.mxu1 %v5805_v45  ;;  %v4976_v28 = vld [vmem:[%s5383_s20 + $0xa4] ss:$36 sps:$4 sm:$0xff]  }
  0x9f   : > { %2366 = vmatprep.mubr.bf16.mxu0 %v4874_v30  ;;  %4320 = vmatprep.subr.bf16.mxu1 %v5811_v46  ;;  %v5009_v30 = vld [vmem:[%s5383_s20 + $0x184] ss:$36 sps:$4 sm:$0xff]  }
  0xa1   : > { %2164 = vmatmul.mubr.bf16.gmra.mrb[36].mxu1 %v4915_v47  ;;  %v5038_v47 = vld [vmem:[%s5383_s20 + $0x2e0] ss:$36 sps:$4 sm:$0xff]  }
  0xa2   : > { %2173 = vmatprep.mubr.bf16.mxu1 %v4928_v49  ;;  %4336 = vmatpush1.bf16.msra.mxu1 %v5819_v50  ;;  %v5042_v49 = vld [vmem:[%s5383_s20 + $0x32c] ss:$36 sps:$4 sm:$0xff]  }
  0xa6   : > { %2367 = vmatmul.mubr.bf16.gmra.mrb[40].mxu0 %v4876_v39  ;;  %v5051_v39 = vld [vmem:[%s5383_s20 + $0x37c] ss:$36 sps:$4 sm:$0xff]  }
  0xa7   : > { %2376 = vmatprep.mubr.bf16.mxu0 %v4883_v43  ;;  %v5036_v43 = vld [vmem:[%s5383_s20 + $0x2e4] ss:$36 sps:$4 sm:$0xff]  }
  0xa9   : > { %2174 = vmatmul.mubr.bf16.gmra.mrb[40].mxu1 %v4930_v55  ;;  %v5048_v55 = vld [vmem:[%s5383_s20 + $0x374] ss:$36 sps:$4 sm:$0xff]  }
  0xaa   : > { %2183 = vmatprep.mubr.bf16.mxu1 %v4943_v57  ;;  %v5065_v57 = vld [vmem:[%s5383_s20 + $0x408] ss:$36 sps:$4 sm:$0xff]  }
  0xae   : > { %2377 = vmatmul.mubr.bf16.gmra.mrb[44].mxu0 %v4885_v51  ;;  %v5063_v51 = vld [vmem:[%s5383_s20 + $0x40c] ss:$36 sps:$4 sm:$0xff]  }
  0xaf   : > { %2386 = vmatprep.mubr.bf16.mxu0 %v4892_v53  ;;  %v5044_v53 = vld [vmem:[%s5383_s20 + $0x328] ss:$36 sps:$4 sm:$0xff]  }
  0xb1   : > { %2184 = vmatmul.mubr.bf16.gmra.mrb[44].mxu1 %v4945_v61  ;;  %v5054_v61 = vld [vmem:[%s5383_s20 + $0x3bc] ss:$36 sps:$4 sm:$0xff]  }
  0xb2   : > { %2193 = vmatprep.mubr.bf16.mxu1 %v4955_v63 }
  0xb6   : > { %2387 = vmatmul.mubr.bf16.gmra.mrb[48].mxu0 %v4894_v58  ;;  %v5069_v58 = vld [vmem:[%s5383_s20 + $0x454] ss:$36 sps:$4 sm:$0xff]  }
  0xb7   : > { %2396 = vmatprep.mubr.bf16.mxu0 %v4907_v59  ;;  %v5050_v59 = vld [vmem:[%s5383_s20 + $0x370] ss:$36 sps:$4 sm:$0xff]  }
  0xb9   : > { %2194 = vmatmul.mubr.bf16.gmra.mrb[48].mxu1 %v4957_v3 }
  0xba   : > { %2203 = vmatprep.mubr.bf16.mxu1 %v4967_v5 }
  0xbe   : > { %2397 = vmatmul.mubr.bf16.gmra.mrb[52].mxu0 %v4909_v0  ;;  %v5071_v0 = vld [vmem:[%s5383_s20 + $0x450] ss:$36 sps:$4 sm:$0xff]  }
  0xbf   : > { %2406 = vmatprep.mubr.bf16.mxu0 %v4922_v1 }
  0xc1   : > { %2204 = vmatmul.mubr.bf16.gmra.mrb[52].mxu1 %v4969_v9 }
  0xc2   : > { %2213 = vmatprep.mubr.bf16.mxu1 %v4979_v11 }
  0xc6   : > { %2407 = vmatmul.mubr.bf16.gmra.mrb[56].mxu0 %v4924_v6  ;;  %v5056_v6 = vld [vmem:[%s5383_s20 + $0x3b8] ss:$36 sps:$4 sm:$0xff]  }
  0xc7   : > { %2416 = vmatprep.mubr.bf16.mxu0 %v4937_v7  ;;  %v5060_v7 = vld [vmem:[%s5383_s20 + $0x404] ss:$36 sps:$4 sm:$0xff]  }
  0xc9   : > { %2214 = vmatmul.mubr.bf16.gmra.mrb[56].mxu1 %v4981_v16  ;;  %v5062_v16 = vld [vmem:[%s5383_s20 + $0x400] ss:$36 sps:$4 sm:$0xff]  }
  0xca   : > { %2223 = vmatprep.mubr.bf16.mxu1 %v4991_v17  ;;  %v5066_v17 = vld [vmem:[%s5383_s20 + $0x44c] ss:$36 sps:$4 sm:$0xff]  }
  0xce   : > { %2417 = vmatmul.mubr.bf16.gmra.mrb[60].mxu0 %v4939_v12 }
  0xcf   : > { %2459 = vmatprep.mubr.bf16.mxu0 %v4954_v13 }
  0xd1   : > { %2224 = vmatmul.mubr.bf16.gmra.mrb[60].mxu1 %v4993_v22 }
  0xd2   : > { %2692 = vmatprep.mubr.bf16.mxu1 %v5005_v25 }
  0xd6   : > { %2460 = vmatmul.mubr.bf16.vlgmr.msra.gmra.mrb[0].mxu0 %v4952_v18 }
  0xd7   : > { %2621 = vmatpush1.bf16.msra.mxu0 %v5556_v31  ;;  %2469 = vmatprep.mubr.bf16.mxu0 %v4964_v20  ;;  %v5003_v31 = vld [vmem:[%s5383_s20 + $0x138] ss:$36 sps:$4 sm:$0xff]  }
  0xd8   : > { %2622 = vmatprep.subr.bf16.mxu0 %v5567_v34  ;;  %v4978_v34 = vld [vmem:[%s5383_s20 + $0xa0] ss:$36 sps:$4 sm:$0xff]  }
  0xd9   : > { %2693 = vmatmul.mubr.bf16.vlgmr.msra.gmra.mrb[64].mxu1 %v5003_v31 }
  0xda   : > { %2702 = vmatprep.mubr.bf16.mxu1 %v5009_v30 }
  0xdb   : > { %2623 = vmatpush1.bf16.msra.mxu0 %v5577_v36  ;;  %v5011_v36 = vld [vmem:[%s5383_s20 + $0x180] ss:$36 sps:$4 sm:$0xff]  }
  0xdc   : > { %2624 = vmatprep.subr.bf16.mxu0 %v5597_v42  ;;  %v4990_v42 = vld [vmem:[%s5383_s20 + $0xe8] ss:$36 sps:$4 sm:$0xff]  }
  0xde   : > { %2470 = vmatmul.mubr.bf16.gmra.mrb[4].mxu0 %v4966_v26  ;;  %v5068_v26 = vld [vmem:[%s5383_s20 + $0x448] ss:$36 sps:$4 sm:$0xff]  }
  0xdf   : > { %2479 = vmatprep.mubr.bf16.mxu0 %v4976_v28  ;;  %2625 = vmatpush1.bf16.msra.mxu0 %v5591_v41  ;;  %v5015_v41 = vld [vmem:[%s5383_s20 + $0x1cc] ss:$36 sps:$4 sm:$0xff]   ;;  %v5074_v28 = vld [vmem:[%s5383_s20 + $0x1c] ss:$36 sps:$4 sm:$0xff]  }
  0xe0   : > { %2626 = vmatprep.subr.bf16.mxu0 %v5603_v44  ;;  %v5000_v44 = vld [vmem:[%s5383_s20 + $0x134] ss:$36 sps:$4 sm:$0xff]  }
  0xe1   : > { %2703 = vmatmul.mubr.bf16.gmra.mrb[68].mxu1 %v5011_v36  ;;  %v5072_v36 = vld [vmem:[%s5383_s20 + $0x18] ss:$36 sps:$4 sm:$0xff]  }
  0xe2   : > { %2712 = vmatprep.mubr.bf16.mxu1 %v5015_v41  ;;  %v5075_v41 = vld [vmem:[%s6668_s1 + $0x400] ss:$8 sps:$4 sm:$0xff]  }
  0xe3   : > { %2627 = vmatpush1.bf16.msra.mxu0 %v5617_v48  ;;  %v5017_v48 = vld [vmem:[%s5383_s20 + $0x1c8] ss:$36 sps:$4 sm:$0xff]  }
  0xe4   : > { %2628 = vmatprep.subr.bf16.mxu0 %v5628_v52  ;;  %v5021_v52 = vld [vmem:[%s5383_s20 + $0x214] ss:$36 sps:$4 sm:$0xff]  }
  0xe6   : > { %2480 = vmatmul.mubr.bf16.gmra.mrb[8].mxu0 %v4978_v34 }
  0xe7   : > { %2489 = vmatprep.mubr.bf16.mxu0 %v4988_v35  ;;  %2629 = vmatpush1.bf16.msra.mxu0 %v5637_v54  ;;  %v5002_v54 = vld [vmem:[%s5383_s20 + $0x130] ss:$36 sps:$4 sm:$0xff]  }
  0xe8   : > { %2630 = vmatprep.subr.bf16.mxu0 %v5644_v56  ;;  %v5006_v56 = vld [vmem:[%s5383_s20 + $0x17c] ss:$36 sps:$4 sm:$0xff]  }
  0xe9   : > { %2713 = vmatmul.mubr.bf16.gmra.mrb[72].mxu1 %v5017_v48 }
  0xea   : > { %2722 = vmatprep.mubr.bf16.mxu1 %v5021_v52  ;;  %v5081_v52 = vld [vmem:[%s6668_s1 + $0x410] ss:$8 sps:$4 sm:$0xff]  }
  0xeb   : > { %2631 = vmatpush1.bf16.msra.mxu0 %v5657_v60  ;;  %v5023_v60 = vld [vmem:[%s5383_s20 + $0x210] ss:$36 sps:$4 sm:$0xff]  }
  0xec   : > { %2632 = vmatprep.subr.bf16.mxu0 %v5664_v62  ;;  %v5027_v62 = vld [vmem:[%s5383_s20 + $0x25c] ss:$36 sps:$4 sm:$0xff]  }
  0xee   : > { %2490 = vmatmul.mubr.bf16.gmra.mrb[12].mxu0 %v4990_v42  ;;  %v5078_v42 = vld [vmem:[%s5383_s20 + $0x64] ss:$36 sps:$4 sm:$0xff]  }
  0xef   : > { %2499 = vmatprep.mubr.bf16.mxu0 %v5000_v44  ;;  %2633 = vmatpush1.bf16.msra.mxu0 %v5677_v2  ;;  %v5008_v2 = vld [vmem:[%s5383_s20 + $0x178] ss:$36 sps:$4 sm:$0xff]  }
  0xf0   : > { %2634 = vmatprep.subr.bf16.mxu0 %v5684_v4  ;;  %v5012_v4 = vld [vmem:[%s5383_s20 + $0x1c4] ss:$36 sps:$4 sm:$0xff]   ;;  %v5083_v44 = vld [vmem:[%s6668_s1 + $0x414] ss:$8 sps:$4 sm:$0xff]  }
  0xf1   : > { %2723 = vmatmul.mubr.bf16.gmra.mrb[76].mxu1 %v5023_v60 }
  0xf2   : > { %2732 = vmatprep.mubr.bf16.mxu1 %v5027_v62 }
  0xf3   : > { %2635 = vmatpush1.bf16.msra.mxu0 %v5697_v8  ;;  %v5029_v8 = vld [vmem:[%s5383_s20 + $0x258] ss:$36 sps:$4 sm:$0xff]  }
  0xf4   : > { %2636 = vmatprep.subr.bf16.mxu0 %v5704_v10  ;;  %v5033_v10 = vld [vmem:[%s5383_s20 + $0x2a4] ss:$36 sps:$4 sm:$0xff]  }
  0xf6   : > { %2500 = vmatmul.mubr.bf16.gmra.mrb[16].mxu0 %v5002_v54 }
  0xf7   : > { %2509 = vmatprep.mubr.bf16.mxu0 %v5006_v56  ;;  %2637 = vmatpush1.bf16.msra.mxu0 %v5717_v14  ;;  %v5014_v14 = vld [vmem:[%s5383_s20 + $0x1c0] ss:$36 sps:$4 sm:$0xff]  }
  0xf8   : > { %2638 = vmatprep.subr.bf16.mxu0 %v5723_v15  ;;  %v5018_v15 = vld [vmem:[%s5383_s20 + $0x20c] ss:$36 sps:$4 sm:$0xff]  }
  0xf9   : > { %2733 = vmatmul.mubr.bf16.gmra.mrb[80].mxu1 %v5029_v8  ;;  %v5089_v56 = vld [vmem:[%s6668_s1 + $0x424] ss:$8 sps:$4 sm:$0xff]   ;;  %v5087_v8 = vld [vmem:[%s6668_s1 + $0x420] ss:$8 sps:$4 sm:$0xff]  }
  0xfa   : > { %2742 = vmatprep.mubr.bf16.mxu1 %v5033_v10  ;;  %v5095_v10 = vld [vmem:[%s6668_s1 + $0x434] ss:$8 sps:$4 sm:$0xff]  }
  0xfb   : > { %2639 = vmatpush1.bf16.msra.mxu0 %v5734_v19  ;;  %v5035_v19 = vld [vmem:[%s5383_s20 + $0x2a0] ss:$36 sps:$4 sm:$0xff]  }
  0xfc   : > { %2640 = vmatprep.subr.bf16.mxu0 %v5741_v21  ;;  %v5039_v21 = vld [vmem:[%s5383_s20 + $0x2ec] ss:$36 sps:$4 sm:$0xff]  }
  0xfe   : > { %2510 = vmatmul.mubr.bf16.gmra.mrb[20].mxu0 %v5008_v2  ;;  %v5080_v2 = vld [vmem:[%s5383_s20 + $0x60] ss:$36 sps:$4 sm:$0xff]  }
  0xff   : > { %2519 = vmatprep.mubr.bf16.mxu0 %v5012_v4  ;;  %2641 = vmatpush1.bf16.msra.mxu0 %v5749_v23  ;;  %v5020_v23 = vld [vmem:[%s5383_s20 + $0x208] ss:$36 sps:$4 sm:$0xff]  }
 0x100   : > { %2642 = vmatprep.subr.bf16.mxu0 %v5755_v24  ;;  %v5024_v24 = vld [vmem:[%s5383_s20 + $0x254] ss:$36 sps:$4 sm:$0xff]   ;;  %v5084_v4 = vld [vmem:[%s5383_s20 + $0xac] ss:$36 sps:$4 sm:$0xff]  }
 0x101   : > { %2743 = vmatmul.mubr.bf16.gmra.mrb[84].mxu1 %v5035_v19 }
 0x102   : > { %2752 = vmatprep.mubr.bf16.mxu1 %v5039_v21 }
 0x103   : > { %2643 = vmatpush1.bf16.msra.mxu0 %v5763_v27  ;;  %v5041_v27 = vld [vmem:[%s5383_s20 + $0x2e8] ss:$36 sps:$4 sm:$0xff]  }
 0x104   : > { %2644 = vmatprep.subr.bf16.mxu0 %v5770_v29  ;;  %v5045_v29 = vld [vmem:[%s5383_s20 + $0x334] ss:$36 sps:$4 sm:$0xff]  }
 0x106   : > { %2520 = vmatmul.mubr.bf16.gmra.mrb[24].mxu0 %v5014_v14 }
 0x107   : > { %2529 = vmatprep.mubr.bf16.mxu0 %v5018_v15  ;;  %2645 = vmatpush1.bf16.msra.mxu0 %v5777_v32  ;;  %v5077_v32 = vld [vmem:[%s6668_s1 + $0x404] ss:$8 sps:$4 sm:$0xff]   ;;  %v5093_v15 = vld [vmem:[%s6668_s1 + $0x430] ss:$8 sps:$4 sm:$0xff]  }
 0x108   : > { %2646 = vmatprep.subr.bf16.mxu0 %v5783_v33  ;;  %v5026_v33 = vld [vmem:[%s5383_s20 + $0x250] ss:$36 sps:$4 sm:$0xff]  }
 0x109   : > { %2753 = vmatmul.mubr.bf16.gmra.mrb[88].mxu1 %v5041_v27  ;;  %v5090_v27 = vld [vmem:[%s5383_s20 + $0xf4] ss:$36 sps:$4 sm:$0xff]  }
 0x10a   : > { %2762 = vmatprep.mubr.bf16.mxu1 %v5045_v29 }
 0x10b   : > { %2647 = vmatpush1.bf16.msra.mxu0 %v5791_v38  ;;  %v5047_v38 = vld [vmem:[%s5383_s20 + $0x330] ss:$36 sps:$4 sm:$0xff]  }
 0x10c   : > { %2648 = vmatprep.subr.bf16.mxu0 %v5798_v40  ;;  %v5032_v40 = vld [vmem:[%s5383_s20 + $0x298] ss:$36 sps:$4 sm:$0xff]  }
 0x10e   : > { %2530 = vmatmul.mubr.bf16.gmra.mrb[28].mxu0 %v5020_v23 }
 0x10f   : > { %2539 = vmatprep.mubr.bf16.mxu0 %v5024_v24  ;;  %2649 = vmatpush1.bf16.msra.mxu0 %v5805_v45  ;;  %v5053_v45 = vld [vmem:[%s5383_s20 + $0x378] ss:$36 sps:$4 sm:$0xff]   ;;  %v5086_v24 = vld [vmem:[%s5383_s20 + $0xa8] ss:$36 sps:$4 sm:$0xff]  }
 0x110   : > { %2650 = vmatprep.subr.bf16.mxu0 %v5811_v46  ;;  %v5057_v46 = vld [vmem:[%s5383_s20 + $0x3c4] ss:$36 sps:$4 sm:$0xff]  }
 0x111   : > { %2763 = vmatmul.mubr.bf16.gmra.mrb[92].mxu1 %v5047_v38  ;;  %v5092_v38 = vld [vmem:[%s5383_s20 + $0xf0] ss:$36 sps:$4 sm:$0xff]  }
 0x112   : > { %2772 = vmatprep.mubr.bf16.mxu1 %v5051_v39 }
 0x113   : > { %2651 = vmatpush1.bf16.msra.mxu0 %v5819_v50  ;;  %v5059_v50 = vld [vmem:[%s5383_s20 + $0x3c0] ss:$36 sps:$4 sm:$0xff]  }
 0x114   : > { %2813 = vmatprep.subr.bf16.mxu0 %v5077_v32 }
 0x116   : > { %2540 = vmatmul.mubr.bf16.gmra.mrb[32].mxu0 %v5026_v33 }
 0x117   : > { %2549 = vmatprep.mubr.bf16.mxu0 %v5030_v37 }
 0x119   : > { %2773 = vmatmul.mubr.bf16.gmra.mrb[96].mxu1 %v5053_v45 }
 0x11a   : > { %2782 = vmatprep.mubr.bf16.mxu1 %v5057_v46 }
 0x11e   : > { %2550 = vmatmul.mubr.bf16.gmra.mrb[36].mxu0 %v5032_v40  ;;  %v6675_v40 = vmov 0  }
 0x11f   : > { %2559 = vmatprep.mubr.bf16.mxu0 %v5036_v43 }
 0x121   : > { %2783 = vmatmul.mubr.bf16.gmra.mrb[100].mxu1 %v5059_v50 }
 0x122   : > { %2792 = vmatprep.mubr.bf16.mxu1 %v5063_v51  ;;  %v5113_v51 = vld [vmem:[%s6670_s3] sm:$0xff]  }
 0x126   : > { %2560 = vmatmul.mubr.bf16.gmra.mrb[40].mxu0 %v5038_v47  ;;  %v5096_v47 = vld [vmem:[%s5383_s20 + $0x20] ss:$36 sps:$4 sm:$0xff]  }
 0x127   : > { %2569 = vmatprep.mubr.bf16.mxu0 %v5042_v49  ;;  %v5112_v49 = vld [vmem:[%s6670_s3 + $0x40] sm:$0xff]  }
 0x128   : > { %4121 = vmatprep.subr.bf16.mxu1 %v5112_v49  ;;  %v5101_v49 = vld [vmem:[%s5383_s20 + $0x188] ss:$36 sps:$4 sm:$0xff]  }
 0x129   : > { %2793 = vmatmul.mubr.bf16.gmra.mrb[104].mxu1 %v5065_v57 }
 0x12a   : > { %2802 = vmatprep.mubr.bf16.mxu1 %v5069_v58  ;;  %4122 = vmatpush3.bf16.msra.mxu1 %v5113_v51  ;;  %v5097_v58 = vld [vmem:[%s5383_s20 + $0x68] ss:$36 sps:$4 sm:$0xff]   ;;  %v5119_v51 = vld [vmem:[%s6670_s3 + $0x18] sm:$0xff]  }
 0x12c   : > { %v5927_v63 = vpop.f32.mrb[0].mxu1 }
 0x12d   : > { %6679 = vst [vmem:[#allocation5_spill] sm:$0xff] %v5927_v63  ;;  %v5930_v1 = vpop.f32.mrb[1].mxu1 }
 0x12e   : > { %2570 = vmatmul.mubr.bf16.gmra.mrb[44].mxu0 %v5044_v53  ;;  %6680 = vst [vmem:[#allocation6_spill] sm:$0xff] %v5930_v1  ;;  %v5932_v3 = vpop.f32.mrb[2].mxu1 }
 0x12f   : > { %2579 = vmatprep.mubr.bf16.mxu0 %v5048_v55  ;;  %6681 = vst [vmem:[#allocation7_spill] sm:$0xff] %v5932_v3  ;;  %v5934_v5 = vpop.f32.mrb[3].mxu1 }
 0x130   : > { %6682 = vst [vmem:[#allocation8_spill] sm:$0xff] %v5934_v5 }
 0x131   : > { %2803 = vmatmul.mubr.bf16.gmra.mrb[108].mxu1 %v5071_v0  ;;  %v5114_v0 = vld [vmem:[%s6670_s3 + $0x48] sm:$0xff]  }
 0x132   : > { %4123 = vmatprep.subr.bf16.mxu1 %v5114_v0 }
 0x134   : > { %v5938_v9 = vpop.f32.mrb[4].mxu1 }
 0x135   : > { %6683 = vst [vmem:[#allocation9_spill] sm:$0xff] %v5938_v9  ;;  %v5940_v11 = vpop.f32.mrb[5].mxu1 }
 0x136   : > { %2580 = vmatmul.mubr.bf16.gmra.mrb[48].mxu0 %v5050_v59  ;;  %6684 = vst [vmem:[#allocation10_spill] sm:$0xff] %v5940_v11  ;;  %v5942_v12 = vpop.f32.mrb[6].mxu1  ;;  %v5105_v11 = vld [vmem:[%s5383_s20 + $0x2a8] ss:$36 sps:$4 sm:$0xff]  }
 0x137   : > { %2589 = vmatprep.mubr.bf16.mxu0 %v5054_v61  ;;  %6685 = vst [vmem:[#allocation11_spill] sm:$0xff] %v5942_v12  ;;  %v5944_v13 = vpop.f32.mrb[7].mxu1 }
 0x138   : > { %6686 = vst [vmem:[#allocation12_spill] sm:$0xff] %v5944_v13 }
 0x13c   : > { %v5948_v18 = vpop.f32.mrb[8].mxu1 }
 0x13d   : > { %6687 = vst [vmem:[#allocation13_spill] sm:$0xff] %v5948_v18  ;;  %v5950_v20 = vpop.f32.mrb[9].mxu1 }
 0x13e   : > { %2590 = vmatmul.mubr.bf16.gmra.mrb[52].mxu0 %v5056_v6  ;;  %6688 = vst [vmem:[#allocation14_spill] sm:$0xff] %v5950_v20  ;;  %v5952_v22 = vpop.f32.mrb[10].mxu1 }
 0x13f   : > { %2599 = vmatprep.mubr.bf16.mxu0 %v5060_v7  ;;  %6689 = vst [vmem:[#allocation15_spill] sm:$0xff] %v5952_v22  ;;  %v5954_v25 = vpop.f32.mrb[11].mxu1  ;;  %v582_v22 = vlaneseq }
 0x140   : > { %6690 = vst [vmem:[#allocation16_spill] sm:$0xff] %v5954_v25 }
 0x141   : > { %v583_v12 = vshrl.u32 %v582_v22, 7 }
 0x143   : > { %v584_v9 = vsub.s32 0, %v583_v12  ;;  %v588_v5 = vsub.s32 1, %v583_v12 }
 0x144   : > { %v5958_v31 = vpop.f32.mrb[12].mxu1 }
 0x145   : > { %6691 = vst [vmem:[#allocation17_spill] sm:$0xff] %v5958_v31  ;;  %v5960_v30 = vpop.f32.mrb[13].mxu1 }
 0x146   : > { %2600 = vmatmul.mubr.bf16.gmra.mrb[56].mxu0 %v5062_v16  ;;  %6692 = vst [vmem:[#allocation18_spill] sm:$0xff] %v5960_v30  ;;  %v5962_v34 = vpop.f32.mrb[14].mxu1  ;;  %v5098_v16 = vld [vmem:[%s5383_s20 + $0xb0] ss:$36 sps:$4 sm:$0xff]  }
 0x147   : > { %2609 = vmatprep.mubr.bf16.mxu0 %v5066_v17  ;;  %6693 = vst [vmem:[#allocation19_spill] sm:$0xff] %v5962_v34  ;;  %v5964_v35 = vpop.f32.mrb[15].mxu1  ;;  %v5115_v17 = vld [vmem:[%s6670_s3 + $0x8] sm:$0xff]   ;;  %v5125_v34 = vld [vmem:[%s6670_s3 + $0x30] sm:$0xff]  }
 0x148   : > { %6694 = vst [vmem:[#allocation20_spill] sm:$0xff] %v5964_v35  ;;  %4124 = vmatpush3.bf16.msra.mxu1 %v5115_v17 }
 0x14c   : > { %v5974_v48 = vpop.f32.mrb[16].mxu1 }
 0x14d   : > { %v5979_v54 = vpop.f32.mrb[17].mxu1 }
 0x14e   : > { %2610 = vmatmul.mubr.bf16.gmra.mrb[60].mxu0 %v5068_v26  ;;  %v5984_v60 = vpop.f32.mrb[18].mxu1 }
 0x14f   : > { %2652 = vmatprep.mubr.bf16.mxu0 %v5074_v28  ;;  %v5986_v62 = vpop.f32.mrb[19].mxu1 }
 0x154   : > { %v5996_v14 = vpop.f32.mrb[20].mxu1 }
 0x155   : > { %v6001_v19 = vpop.f32.mrb[21].mxu1 }
 0x156   : > { %2653 = vmatmul.mubr.bf16.vlgmr.msra.gmra.mrb[0].mxu0 %v5072_v36  ;;  %v6003_v21 = vpop.f32.mrb[22].mxu1 }
 0x157   : > { %2814 = vmatpush1.bf16.msra.mxu0 %v5075_v41  ;;  %2662 = vmatprep.mubr.bf16.mxu0 %v5078_v42  ;;  %v6005_v23 = vpop.f32.mrb[23].mxu1  ;;  %v5099_v42 = vld [vmem:[%s5383_s20 + $0xf8] ss:$36 sps:$4 sm:$0xff]  }
 0x158   : > { %2815 = vmatprep.subr.bf16.mxu0 %v5083_v44  ;;  %v5116_v44 = vld [vmem:[%s6670_s3 + $0x50] sm:$0xff]  }
 0x159   : > { %4125 = vmatprep.subr.bf16.mxu1 %v5116_v44  ;;  %v5120_v44 = vld [vmem:[%s6670_s3 + $0x60] sm:$0xff]  }
 0x15b   : > { %2816 = vmatpush1.bf16.msra.mxu0 %v5081_v52 }
 0x15c   : > { %2817 = vmatprep.subr.bf16.mxu0 %v5089_v56  ;;  %v6009_v29 = vpop.f32.mrb[24].mxu1  ;;  %v5117_v56 = vld [vmem:[%s6670_s3 + $0x10] sm:$0xff]  }
 0x15d   : > { %v6011_v32 = vpop.f32.mrb[25].mxu1  ;;  %4126 = vmatpush3.bf16.msra.mxu1 %v5117_v56 }
 0x15e   : > { %2663 = vmatmul.mubr.bf16.gmra.mrb[4].mxu0 %v5080_v2  ;;  %v6013_v33 = vpop.f32.mrb[26].mxu1 }
 0x15f   : > { %2672 = vmatprep.mubr.bf16.mxu0 %v5084_v4  ;;  %2818 = vmatpush1.bf16.msra.mxu0 %v5087_v8  ;;  %v6015_v37 = vpop.f32.mrb[27].mxu1 }
 0x160   : > { %2819 = vmatprep.subr.bf16.mxu0 %v5095_v10  ;;  %v5100_v10 = vld [vmem:[%s5383_s20 + $0x140] ss:$36 sps:$4 sm:$0xff]  }
 0x163   : > { %2820 = vmatpush1.bf16.msra.mxu0 %v5093_v15 }
 0x164   : > { %v6018_v39 = vpop.f32.mrb[28].mxu1 }
 0x165   : > { %v6021_v43 = vpop.f32.mrb[29].mxu1 }
 0x166   : > { %2673 = vmatmul.mubr.bf16.gmra.mrb[8].mxu0 %v5086_v24  ;;  %v6023_v45 = vpop.f32.mrb[30].mxu1 }
 0x167   : > { %2682 = vmatprep.mubr.bf16.mxu0 %v5090_v27  ;;  %v6025_v46 = vpop.f32.mrb[31].mxu1  ;;  %v5118_v27 = vld [vmem:[%s6670_s3 + $0x58] sm:$0xff]  }
 0x168   : > { %4127 = vmatprep.subr.bf16.mxu1 %v5118_v27 }
 0x169   : > { %4128 = vmatpush3.bf16.msra.mxu1 %v5119_v51 }
 0x16a   : > { %4129 = vmatprep.subr.bf16.mxu1 %v5120_v44  ;;  %v5103_v44 = vld [vmem:[%s5383_s20 + $0x218] ss:$36 sps:$4 sm:$0xff]  }
 0x16c   : > { %v6032_v50 = vpop.f32.mrb[32].mxu1 }
 0x16d   : > { %v6038_v53 = vpop.f32.mrb[33].mxu1 }
 0x16e   : > { %2683 = vmatmul.mubr.bf16.gmra.mrb[12].mxu0 %v5092_v38  ;;  %v6040_v55 = vpop.f32.mrb[34].mxu1 }
 0x16f   : > { %2845 = vmatprep.mubr.bf16.mxu0 %v6675_v40  ;;  %v6042_v57 = vpop.f32.mrb[35].mxu1 }
 0x174   : > { %v6046_v59 = vpop.f32.mrb[36].mxu1 }
 0x175   : > { %v6049_v61 = vpop.f32.mrb[37].mxu1 }
 0x176   : > { %4073 = vmatmul.mubr.msk.bf16.vlgmr.msra.gmra.mrb[0].mxu0 %vm1992_vm0, %v5096_v47  ;;  %v6054_v6 = vpop.f32.mrb[38].mxu1 }
 0x177   : > { %2855 = vmatprep.mubr.bf16.mxu0 %v6675_v40  ;;  %v6056_v7 = vpop.f32.mrb[39].mxu1 }
 0x17c   : > { %v6063_v26 = vpop.f32.mrb[40].mxu1 }
 0x17d   : > { %v6066_v28 = vpop.f32.mrb[41].mxu1 }
 0x17e   : > { %4074 = vmatmul.mubr.msk.bf16.gmra.mrb[4].mxu0 %vm1992_vm0, %v5097_v58  ;;  %v6068_v36 = vpop.f32.mrb[42].mxu1 }
 0x17f   : > { %2865 = vmatprep.mubr.bf16.mxu0 %v6675_v40  ;;  %v6070_v41 = vpop.f32.mrb[43].mxu1 }
 0x184   : > { %v6077_v52 = vpop.f32.mrb[44].mxu1 }
 0x185   : > { %v6083_v2 = vpop.f32.mrb[45].mxu1 }
 0x186   : > { %4075 = vmatmul.mubr.msk.bf16.gmra.mrb[8].mxu0 %vm1992_vm0, %v5098_v16  ;;  %v6085_v4 = vpop.f32.mrb[46].mxu1 }
 0x187   : > { %2875 = vmatprep.mubr.bf16.mxu0 %v6675_v40  ;;  %v6087_v8 = vpop.f32.mrb[47].mxu1 }
 0x18c   : > { %v6091_v15 = vpop.f32.mrb[48].mxu1 }
 0x18d   : > { %v6094_v24 = vpop.f32.mrb[49].mxu1 }
 0x18e   : > { %4076 = vmatmul.mubr.msk.bf16.gmra.mrb[12].mxu0 %vm1992_vm0, %v5099_v42  ;;  %v6099_v38 = vpop.f32.mrb[50].mxu1  ;;  %v5102_v42 = vld [vmem:[%s5383_s20 + $0x1d0] ss:$36 sps:$4 sm:$0xff]  }
 0x18f   : > { %2885 = vmatprep.mubr.bf16.mxu0 %v6675_v40  ;;  %v6101_v47 = vpop.f32.mrb[51].mxu1 }
 0x194   : > { %v6108_v58 = vpop.f32.mrb[52].mxu1 }
 0x195   : > { %6695 = vst [vmem:[#allocation21_spill] sm:$0xff] %v6108_v58  ;;  %v6111_v0 = vpop.f32.mrb[53].mxu1 }
 0x196   : > { %4077 = vmatmul.mubr.msk.bf16.gmra.mrb[64].mxu0 %vm1992_vm0, %v5100_v10  ;;  %6696 = vst [vmem:[#allocation22_spill] sm:$0xff] %v6111_v0  ;;  %v6113_v16 = vpop.f32.mrb[54].mxu1  ;;  %v5121_v10 = vld [vmem:[%s6670_s3 + $0x20] sm:$0xff]  }
 0x197   : > { %2895 = vmatprep.mubr.bf16.mxu0 %v6675_v40  ;;  %6697 = vst [vmem:[#allocation23_spill] sm:$0xff] %v6113_v16  ;;  %v6115_v17 = vpop.f32.mrb[55].mxu1  ;;  %4130 = vmatpush3.bf16.msra.mxu1 %v5121_v10  ;;  %v5126_v10 = vld [vmem:[%s6670_s3 + $0x78] sm:$0xff]  }
 0x198   : > { %6698 = vst [vmem:[#allocation24_spill] sm:$0xff] %v6115_v17 }
 0x19c   : > { %v6122_v56 = vpop.f32.mrb[56].mxu1 }
 0x19d   : > { %6699 = vst [vmem:[#allocation25_spill] sm:$0xff] %v6122_v56  ;;  %v6128_v27 = vpop.f32.mrb[57].mxu1 }
 0x19e   : > { %4078 = vmatmul.mubr.msk.bf16.gmra.mrb[68].mxu0 %vm1992_vm0, %v5101_v49  ;;  %6700 = vst [vmem:[#allocation26_spill] sm:$0xff] %v6128_v27  ;;  %v5122_v49 = vld [vmem:[%s6670_s3 + $0x68] sm:$0xff]   ;;  %v6133_v51 = vpop.f32.mrb[58].mxu1 }
 0x19f   : > { %2905 = vmatprep.mubr.bf16.mxu0 %v6675_v40  ;;  %6701 = vst [vmem:[#allocation27_spill] sm:$0xff] %v6133_v51  ;;  %v6138_v35 = vpop.f32.mrb[59].mxu1  ;;  %4131 = vmatprep.subr.bf16.mxu1 %v5122_v49  ;;  %v6704_v49 = vmov 0   ;;  %v5107_v51 = vld [vmem:[%s5383_s20 + $0x338] ss:$36 sps:$4 sm:$0xff]  }
 0x1a0   : > { %6702 = vst [vmem:[#allocation28_spill] sm:$0xff] %v6138_v35 }
 0x1a4   : > { %v6151_v30 = vpop.f32.mrb[60].mxu1 }
 0x1a5   : > { %6703 = vst [vmem:[#allocation29_spill] sm:$0xff] %v6151_v30  ;;  %v6154_v31 = vpop.f32.mrb[61].mxu1 }
 0x1a6   : > { %4079 = vmatmul.mubr.msk.bf16.gmra.mrb[72].mxu0 %vm1992_vm0, %v5102_v42  ;;  %v5123_v42 = vld [vmem:[%s6670_s3 + $0x28] sm:$0xff]   ;;  %6705 = vst [vmem:[#allocation30_spill] sm:$0xff] %v6154_v31  ;;  %v6156_v25 = vpop.f32.mrb[62].mxu1 }
 0x1a7   : > { %2915 = vmatprep.mubr.bf16.mxu0 %v6675_v40  ;;  %v5124_v40 = vld [vmem:[%s6670_s3 + $0x70] sm:$0xff]   ;;  %4132 = vmatpush3.bf16.msra.mxu1 %v5123_v42  ;;  %6706 = vst [vmem:[#allocation31_spill] sm:$0xff] %v6156_v25  ;;  %v6158_v42 = vpop.f32.mrb[63].mxu1 }
 0x1a8   : > { %4133 = vmatprep.subr.bf16.mxu1 %v5124_v40  ;;  %6707 = vst [vmem:[#allocation32_spill] sm:$0xff] %v6158_v42  ;;  %v5104_v40 = vld [vmem:[%s5383_s20 + $0x260] ss:$36 sps:$4 sm:$0xff]   ;;  %v5106_v42 = vld [vmem:[%s5383_s20 + $0x2f0] ss:$36 sps:$4 sm:$0xff]  }
 0x1ab   : > { %4134 = vmatpush3.bf16.msra.mxu1 %v5125_v34 }
 0x1ac   : > { %4135 = vmatprep.subr.bf16.mxu1 %v5126_v10  ;;  %v2694_v20 = vpop.f32.mrb[64].mxu1  ;;  %v580_v10 = vld [vmem:[%s6669_s2] sm:$0x3] }
 0x1ad   : > { %v6169_v63 = vrot.slane %v580_v10, %v584_v9  ;;  %v6172_v22 = vrot.slane %v580_v10, %v588_v5 }
 0x1ae   : > { %4080 = vmatmul.mubr.msk.bf16.gmra.mrb[76].mxu0 %vm1992_vm0, %v5103_v44  ;;  %v2696_v44 = vpop.f32.mrb[65].mxu1 }
 0x1af   : > { %2925 = vmatprep.mubr.bf16.mxu0 %v6704_v49  ;;  %v2698_v18 = vpop.f32.mrb[66].mxu1  ;;  %v2118_v12 = vadd.f32 %v5979_v54, %v6172_v22  ;;  %v2120_v9 = vadd.f32 %v5984_v60, %v6169_v63  ;;  %v2122_v5 = vadd.f32 %v5986_v62, %v6172_v22  ;;  %v5127_v60 = vld [vmem:[%s6670_s3 + $0x38] sm:$0xff]   ;;  %v2126_v62 = vadd.f32 %v5996_v14, %v6169_v63 }
 0x1b0   : > { %v2700_v13 = vpop.f32.mrb[67].mxu1  ;;  %4136 = vmatpush3.bf16.msra.mxu1 %v5127_v60 }
 0x1b4   : > { %v2704_v34 = vpop.f32.mrb[68].mxu1 }
 0x1b6   : > { %4081 = vmatmul.mubr.msk.bf16.gmra.mrb[80].mxu0 %vm1992_vm0, %v5104_v40  ;;  %v2706_v40 = vpop.f32.mrb[69].mxu1 }
 0x1b7   : > { %2935 = vmatprep.mubr.bf16.mxu0 %v6704_v49  ;;  %v2708_v3 = vpop.f32.mrb[70].mxu1 }
 0x1b8   : > { %v2710_v1 = vpop.f32.mrb[71].mxu1 }
 0x1bc   : > { %v6177_v25 = vpop.f32.mrb[72].mxu1 }
 0x1bd   : > { %v6182_v31 = vpop.f32.mrb[73].mxu1 }
 0x1be   : > { %4082 = vmatmul.mubr.msk.bf16.gmra.mrb[84].mxu0 %vm1992_vm0, %v5105_v11  ;;  %v2116_v11 = vadd.f32 %v5974_v48, %v6169_v63  ;;  %v6186_v30 = vpop.f32.mrb[74].mxu1 }
 0x1bf   : > { %2945 = vmatprep.mubr.bf16.mxu0 %v6704_v49  ;;  %v6190_v10 = vpop.f32.mrb[75].mxu1 }
 0x1c6   : > { %4083 = vmatmul.mubr.msk.bf16.gmra.mrb[88].mxu0 %vm1992_vm0, %v5106_v42 }
 0x1c7   : > { %2955 = vmatprep.mubr.bf16.mxu0 %v6704_v49 }
 0x1c9   : > { %v2501_v48 = vpop.f32.mrb[16].mxu0 }
 0x1ca   : > { %v4370_v42 = vadd.f32 %v2501_v48, %v2116_v11  ;;  %v2503_v35 = vpop.f32.mrb[17].mxu0 }
 0x1cb   : > { %v4374_v27 = vadd.f32 %v2503_v35, %v2118_v12  ;;  %v2505_v54 = vpop.f32.mrb[18].mxu0  ;;  %v6205_v35 = vpop.f32.mrb[76].mxu1 }
 0x1cc   : > { %v4378_v56 = vadd.f32 %v2505_v54, %v2120_v9  ;;  %v6193_v17 = vadd.f32 %v4370_v42, %v2694_v20  ;;  %v2507_v16 = vpop.f32.mrb[19].mxu0  ;;  %v2128_v20 = vadd.f32 %v6001_v19, %v6172_v22 }
 0x1cd   : > { %v4382_v0 = vadd.f32 %v2507_v16, %v2122_v5  ;;  %v6198_v58 = vadd.f32 %v4374_v27, %v2696_v44  ;;  %v2726_v16 = vpop.f32.mrb[77].mxu1  ;;  %v2130_v27 = vadd.f32 %v6003_v21, %v6169_v63  ;;  %v5108_v5 = vld [vmem:[%s5383_s20 + $0x380] ss:$36 sps:$4 sm:$0xff]   ;;  %v2136_v21 = vadd.f32 %v6009_v29, %v6169_v63 }
 0x1ce   : > { %v6202_v11 = vadd.f32 %v4378_v56, %v2698_v18  ;;  %4084 = vmatmul.mubr.msk.bf16.gmra.mrb[92].mxu0 %vm1992_vm0, %v5107_v51  ;;  %v2728_v14 = vpop.f32.mrb[78].mxu1  ;;  %v2132_v18 = vadd.f32 %v6005_v23, %v6172_v22  ;;  %v2142_v29 = vadd.f32 %v6015_v37, %v6172_v22 }
 0x1cf   : > { %v6209_v12 = vadd.f32 %v4382_v0, %v2700_v13  ;;  %2965 = vmatprep.mubr.bf16.mxu0 %v6704_v49  ;;  %v2730_v51 = vpop.f32.mrb[79].mxu1 }
 0x1d0   : > { %v2734_v23 = vpop.f32.mrb[80].mxu1 }
 0x1d1   : > { %6708 = vst [vmem:[#allocation33_spill] sm:$0xff] %v6209_v12  ;;  %v2511_v56 = vpop.f32.mrb[20].mxu0 }
 0x1d2   : > { %v4386_v44 = vadd.f32 %v2511_v56, %v2126_v62  ;;  %v2513_v9 = vpop.f32.mrb[21].mxu0  ;;  %v2138_v62 = vadd.f32 %v6011_v32, %v6172_v22 }
 0x1d3   : > { %v4390_v48 = vadd.f32 %v2513_v9, %v2128_v20  ;;  %v2515_v42 = vpop.f32.mrb[22].mxu0  ;;  %v5109_v9 = vld [vmem:[%s5383_s20 + $0x3c8] ss:$36 sps:$4 sm:$0xff]  }
 0x1d4   : > { %v4394_v19 = vadd.f32 %v2515_v42, %v2130_v27  ;;  %v6217_v13 = vadd.f32 %v4386_v44, %v2704_v34  ;;  %v2517_v0 = vpop.f32.mrb[23].mxu0  ;;  %v2736_v34 = vpop.f32.mrb[81].mxu1 }
 0x1d5   : > { %v4398_v54 = vadd.f32 %v2517_v0, %v2132_v18  ;;  %v6219_v60 = vadd.f32 %v4390_v48, %v2706_v40  ;;  %v2140_v40 = vadd.f32 %v6013_v33, %v6169_v63  ;;  %v2738_v27 = vpop.f32.mrb[82].mxu1  ;;  %v2146_v33 = vadd.f32 %v6018_v39, %v6169_v63 }
 0x1d6   : > { %v6223_v12 = vadd.f32 %v4394_v19, %v2708_v3  ;;  %4085 = vmatmul.mubr.msk.bf16.gmra.mrb[96].mxu0 %vm1992_vm0, %v5108_v5  ;;  %v2740_v18 = vpop.f32.mrb[83].mxu1 }
 0x1d7   : > { %v6228_v20 = vadd.f32 %v4398_v54, %v2710_v1  ;;  %2975 = vmatprep.mubr.bf16.mxu0 %v6704_v49  ;;  %v2744_v54 = vpop.f32.mrb[84].mxu1 }
 0x1d9   : > { %v2521_v3 = vpop.f32.mrb[24].mxu0 }
 0x1da   : > { %v4402_v56 = vadd.f32 %v2521_v3, %v2136_v21  ;;  %v2523_v44 = vpop.f32.mrb[25].mxu0  ;;  %v2148_v21 = vadd.f32 %v6021_v43, %v6172_v22 }
 0x1db   : > { %v4406_v5 = vadd.f32 %v2523_v44, %v2138_v62  ;;  %v2525_v48 = vpop.f32.mrb[26].mxu0  ;;  %v2150_v62 = vadd.f32 %v6023_v45, %v6169_v63  ;;  %v5110_v44 = vld [vmem:[%s5383_s20 + $0x410] ss:$36 sps:$4 sm:$0xff]   ;;  %v2156_v45 = vadd.f32 %v6032_v50, %v6169_v63  ;;  %v2162_v50 = vadd.f32 %v6042_v57, %v6172_v22 }
 0x1dc   : > { %v4410_v32 = vadd.f32 %v2525_v48, %v2140_v40  ;;  %v6237_v1 = vadd.f32 %v4402_v56, %v6177_v25  ;;  %v2527_v42 = vpop.f32.mrb[27].mxu0 }
 0x1dd   : > { %v4414_v19 = vadd.f32 %v2527_v42, %v2142_v29  ;;  %v6240_v0 = vadd.f32 %v4406_v5, %v6182_v31  ;;  %v2746_v31 = vpop.f32.mrb[85].mxu1 }
 0x1de   : > { %v6245_v37 = vadd.f32 %v4410_v32, %v6186_v30  ;;  %4086 = vmatmul.mubr.msk.bf16.gmra.mrb[100].mxu0 %vm1992_vm0, %v5109_v9  ;;  %v2748_v40 = vpop.f32.mrb[86].mxu1  ;;  %v2152_v30 = vadd.f32 %v6025_v46, %v6172_v22 }
 0x1df   : > { %v6251_v25 = vadd.f32 %v4414_v19, %v6190_v10  ;;  %2985 = vmatprep.mubr.bf16.mxu0 %v6704_v49  ;;  %v2750_v29 = vpop.f32.mrb[87].mxu1 }
 0x1e0   : > { %v2754_v19 = vpop.f32.mrb[88].mxu1 }
 0x1e1   : > { %v2531_v39 = vpop.f32.mrb[28].mxu0 }
 0x1e2   : > { %v4418_v3 = vadd.f32 %v2531_v39, %v2146_v33  ;;  %v2533_v56 = vpop.f32.mrb[29].mxu0  ;;  %v2158_v33 = vadd.f32 %v6038_v53, %v6172_v22 }
 0x1e3   : > { %v4422_v9 = vadd.f32 %v2533_v56, %v2148_v21  ;;  %v2535_v43 = vpop.f32.mrb[30].mxu0  ;;  %v5111_v56 = vld [vmem:[%s5383_s20 + $0x458] ss:$36 sps:$4 sm:$0xff]   ;;  %s5136_s20 = scalar_lea.vmem %s6618_s18, 4096 }
 0x1e4   : > { %v4426_v5 = vadd.f32 %v2535_v43, %v2150_v62  ;;  %v6260_v10 = vadd.f32 %v4418_v3, %v6205_v35  ;;  %v2537_v48 = vpop.f32.mrb[31].mxu0  ;;  %v2756_v35 = vpop.f32.mrb[89].mxu1  ;;  %p5137_p11 = scmp.ne.s32.totalorder %s6618_s18, %s5136_s20  ;;  %p5144_p1 = scmp.lt.s32.totalorder %s5142_s8, %s5136_s20 }
 0x1e5   : > { %v4430_v32 = vadd.f32 %v2537_v48, %v2152_v30  ;;  %v6262_v42 = vadd.f32 %v4422_v9, %v2726_v16  ;;  %v2160_v16 = vadd.f32 %v6040_v55, %v6169_v63  ;;  %v2758_v62 = vpop.f32.mrb[90].mxu1  ;;  %v2166_v55 = vadd.f32 %v6046_v59, %v6169_v63 }
 0x1e6   : > { %v6266_v46 = vadd.f32 %v4426_v5, %v2728_v14  ;;  %4087 = vmatmul.mubr.msk.bf16.gmra.mrb[104].mxu0 %vm1992_vm0, %v5110_v44  ;;  %v2760_v30 = vpop.f32.mrb[91].mxu1  ;;  %p5138_p12 = pnand %p5137_p11, %p5282_p5  ;;  %p5145_p2 = por %p5144_p1, %p5143_p0 }
 0x1e7   : > { %v6271_v21 = vadd.f32 %v4430_v32, %v2730_v51  ;;  %2995 = vmatprep.mubr.bf16.mxu0 %v6704_v49  ;;  %v2764_v57 = vpop.f32.mrb[92].mxu1  ;;  %v2168_v32 = vadd.f32 %v6049_v61, %v6172_v22 }
 0x1e8   : > { %p5139_p13 = pneg %p5138_p12 }
 0x1e9   : > { %v2541_v14 = vpop.f32.mrb[32].mxu0 }
 0x1ea   : > { %v4434_v39 = vadd.f32 %v2541_v14, %v2156_v45  ;;  %v2543_v3 = vpop.f32.mrb[33].mxu0  ;;  %p5146_p3 = pnand %p5145_p2, %p5139_p13 }
 0x1eb   : > { %v4438_v44 = vadd.f32 %v2543_v3, %v2158_v33  ;;  %v2545_v9 = vpop.f32.mrb[34].mxu0  ;;  %v2766_v33 = vpop.f32.mrb[93].mxu1 }
 0x1ec   : > { %v4442_v53 = vadd.f32 %v2545_v9, %v2160_v16  ;;  %v6279_v51 = vadd.f32 %v4434_v39, %v2734_v23  ;;  %v2547_v43 = vpop.f32.mrb[35].mxu0  ;;  %v2170_v23 = vadd.f32 %v6054_v6, %v6169_v63  ;;  %v2768_v16 = vpop.f32.mrb[94].mxu1  ;;  %v2176_v6 = vadd.f32 %v6063_v26, %v6169_v63 }
 0x1ed   : > { %v4446_v49 = vadd.f32 %v2547_v43, %v2162_v50  ;;  %v6281_v5 = vadd.f32 %v4438_v44, %v2736_v34  ;;  %v2172_v34 = vadd.f32 %v6056_v7, %v6172_v22  ;;  %v2770_v59 = vpop.f32.mrb[95].mxu1  ;;  %v2178_v7 = vadd.f32 %v6066_v28, %v6172_v22 }
 0x1ee   : > { %v6285_v48 = vadd.f32 %v4442_v53, %v2738_v27  ;;  %4088 = vmatmul.mubr.msk.bf16.gmra.mrb[108].mxu0 %vm1992_vm0, %v5111_v56  ;;  %v2774_v43 = vpop.f32.mrb[96].mxu1 }
 0x1ef   : > { %v6290_v45 = vadd.f32 %v4446_v49, %v2740_v18 }
 0x1f1   : > { %v2551_v50 = vpop.f32.mrb[36].mxu0 }
 0x1f2   : > { %v4450_v27 = vadd.f32 %v2551_v50, %v2166_v55  ;;  %v2553_v14 = vpop.f32.mrb[37].mxu0  ;;  %v2776_v55 = vpop.f32.mrb[97].mxu1 }
 0x1f3   : > { %v4454_v39 = vadd.f32 %v2553_v14, %v2168_v32  ;;  %v2555_v3 = vpop.f32.mrb[38].mxu0  ;;  %v2778_v32 = vpop.f32.mrb[98].mxu1 }
 0x1f4   : > { %v4458_v56 = vadd.f32 %v2555_v3, %v2170_v23  ;;  %v6296_v44 = vadd.f32 %v4450_v27, %v2744_v54  ;;  %v2557_v61 = vpop.f32.mrb[39].mxu0  ;;  %v2180_v54 = vadd.f32 %v6068_v36, %v6169_v63  ;;  %v2186_v36 = vadd.f32 %v6077_v52, %v6169_v63 }
 0x1f5   : > { %v4462_v18 = vadd.f32 %v2557_v61, %v2172_v34  ;;  %v6298_v9 = vadd.f32 %v4454_v39, %v2746_v31  ;;  %v2182_v31 = vadd.f32 %v6070_v41, %v6172_v22  ;;  %v2780_v34 = vpop.f32.mrb[99].mxu1  ;;  %v2188_v41 = vadd.f32 %v6083_v2, %v6172_v22 }
 0x1f6   : > { %v6302_v53 = vadd.f32 %v4458_v56, %v2748_v40  ;;  %v2784_v61 = vpop.f32.mrb[100].mxu1 }
 0x1f7   : > { %v6306_v49 = vadd.f32 %v4462_v18, %v2750_v29 }
 0x1f9   : > { %v2561_v23 = vpop.f32.mrb[40].mxu0 }
 0x1fa   : > { %v4466_v50 = vadd.f32 %v2561_v23, %v2176_v6  ;;  %v2563_v26 = vpop.f32.mrb[41].mxu0  ;;  %v2786_v6 = vpop.f32.mrb[101].mxu1 }
 0x1fb   : > { %v4470_v40 = vadd.f32 %v2563_v26, %v2178_v7  ;;  %v2565_v27 = vpop.f32.mrb[42].mxu0  ;;  %v2788_v7 = vpop.f32.mrb[102].mxu1 }
 0x1fc   : > { %v4474_v14 = vadd.f32 %v2565_v27, %v2180_v54  ;;  %v6312_v39 = vadd.f32 %v4466_v50, %v2754_v19  ;;  %v2567_v28 = vpop.f32.mrb[43].mxu0  ;;  %v2190_v19 = vadd.f32 %v6085_v4, %v6169_v63  ;;  %v2196_v4 = vadd.f32 %v6091_v15, %v6169_v63 }
 0x1fd   : > { %v4478_v29 = vadd.f32 %v2567_v28, %v2182_v31  ;;  %v6314_v3 = vadd.f32 %v4470_v40, %v2756_v35  ;;  %v2192_v35 = vadd.f32 %v6087_v8, %v6172_v22  ;;  %v2790_v31 = vpop.f32.mrb[103].mxu1  ;;  %v2198_v8 = vadd.f32 %v6094_v24, %v6172_v22 }
 0x1fe   : > { %v6318_v56 = vadd.f32 %v4474_v14, %v2758_v62  ;;  %v2794_v28 = vpop.f32.mrb[104].mxu1 }
 0x1ff   : > { %v6322_v18 = vadd.f32 %v4478_v29, %v2760_v30 }
 0x201   : > { %v2571_v54 = vpop.f32.mrb[44].mxu0 }
 0x202   : > { %v4482_v23 = vadd.f32 %v2571_v54, %v2186_v36  ;;  %v2573_v52 = vpop.f32.mrb[45].mxu0  ;;  %v2796_v36 = vpop.f32.mrb[105].mxu1 }
 0x203   : > { %v4486_v62 = vadd.f32 %v2573_v52, %v2188_v41  ;;  %v2575_v50 = vpop.f32.mrb[46].mxu0  ;;  %v2798_v41 = vpop.f32.mrb[106].mxu1 }
 0x204   : > { %v4490_v26 = vadd.f32 %v2575_v50, %v2190_v19  ;;  %v6328_v40 = vadd.f32 %v4482_v23, %v2764_v57  ;;  %v2577_v2 = vpop.f32.mrb[47].mxu0  ;;  %v2200_v57 = vadd.f32 %v6099_v38, %v6169_v63 }
 0x205   : > { %v4494_v30 = vadd.f32 %v2577_v2, %v2192_v35  ;;  %v6330_v27 = vadd.f32 %v4486_v62, %v2766_v33  ;;  %v2202_v33 = vadd.f32 %v6101_v47, %v6172_v22  ;;  %v2800_v35 = vpop.f32.mrb[107].mxu1  ;;  %v6714_v47 = vld [vmem:[#allocation22_spill] sm:$0xff] }
 0x206   : > { %v6334_v14 = vadd.f32 %v4490_v26, %v2768_v16  ;;  %v6712_v26 = vld [vmem:[#allocation21_spill] sm:$0xff] }
 0x207   : > { %v6338_v29 = vadd.f32 %v4494_v30, %v2770_v59  ;;  %v2206_v38 = vadd.f32 %v6712_v26, %v6169_v63  ;;  %v2804_v30 = vpop.f32.mrb[108].mxu1 }
 0x209   : > { %6709 = vst [vmem:[#allocation34_spill] sm:$0xff] %v6338_v29  ;;  %v2581_v19 = vpop.f32.mrb[48].mxu0  ;;  %v2208_v29 = vadd.f32 %v6714_v47, %v6172_v22 }
 0x20a   : > { %v4498_v54 = vadd.f32 %v2581_v19, %v2196_v4  ;;  %v2583_v15 = vpop.f32.mrb[49].mxu0 }
 0x20b   : > { %v4502_v16 = vadd.f32 %v2583_v15, %v2198_v8  ;;  %v2585_v23 = vpop.f32.mrb[50].mxu0  ;;  %v2806_v8 = vpop.f32.mrb[109].mxu1 }
 0x20c   : > { %v4506_v52 = vadd.f32 %v2585_v23, %v2200_v57  ;;  %v6344_v62 = vadd.f32 %v4498_v54, %v2774_v43  ;;  %v2587_v24 = vpop.f32.mrb[51].mxu0  ;;  %v6716_v57 = vld [vmem:[#allocation23_spill] sm:$0xff]  ;;  %v2808_v19 = vpop.f32.mrb[110].mxu1 }
 0x20d   : > { %v4510_v59 = vadd.f32 %v2587_v24, %v2202_v33  ;;  %v6346_v50 = vadd.f32 %v4502_v16, %v2776_v55  ;;  %v2210_v43 = vadd.f32 %v6716_v57, %v6169_v63  ;;  %v6717_v33 = vld [vmem:[#allocation24_spill] sm:$0xff]  ;;  %v2810_v15 = vpop.f32.mrb[111].mxu1 }
 0x20e   : > { %6710 = vst [vmem:[#allocation35_spill] sm:$0xff] %v6344_v62  ;;  %v6350_v2 = vadd.f32 %v4506_v52, %v2778_v32  ;;  %v2212_v55 = vadd.f32 %v6717_v33, %v6172_v22  ;;  %v6719_v33 = vld [vmem:[#allocation26_spill] sm:$0xff] }
 0x20f   : > { %6711 = vst [vmem:[#allocation36_spill] sm:$0xff] %v6346_v50  ;;  %v6354_v4 = vadd.f32 %v4510_v59, %v2780_v34  ;;  %v2218_v50 = vadd.f32 %v6719_v33, %v6172_v22  ;;  %v6723_v33 = vld [vmem:[#allocation30_spill] sm:$0xff] }
 0x210   : > { %6713 = vst [vmem:[#allocation21_spill] sm:$0xff] %v6350_v2 }
 0x211   : > { %6715 = vst [vmem:[#allocation22_spill] sm:$0xff] %v6354_v4  ;;  %v2591_v54 = vpop.f32.mrb[52].mxu0  ;;  %v6718_v4 = vld [vmem:[#allocation25_spill] sm:$0xff] }
 0x212   : > { %v4514_v16 = vadd.f32 %v2591_v54, %v2206_v38  ;;  %v2593_v23 = vpop.f32.mrb[53].mxu0  ;;  %v2216_v57 = vadd.f32 %v6718_v4, %v6169_v63 }
 0x213   : > { %v4518_v32 = vadd.f32 %v2593_v23, %v2208_v29  ;;  %v2595_v52 = vpop.f32.mrb[54].mxu0  ;;  %v6720_v29 = vld [vmem:[#allocation27_spill] sm:$0xff] }
 0x214   : > { %v4522_v24 = vadd.f32 %v2595_v52, %v2210_v43  ;;  %v6360_v26 = vadd.f32 %v4514_v16, %v2784_v61  ;;  %v2597_v47 = vpop.f32.mrb[55].mxu0  ;;  %v2220_v38 = vadd.f32 %v6720_v29, %v6169_v63  ;;  %v6721_v61 = vld [vmem:[#allocation28_spill] sm:$0xff]  ;;  %v2228_v29 = vadd.f32 %v6723_v33, %v6172_v22 }
 0x215   : > { %v4526_v34 = vadd.f32 %v2597_v47, %v2212_v55  ;;  %v6362_v59 = vadd.f32 %v4518_v32, %v2786_v6  ;;  %v2222_v43 = vadd.f32 %v6721_v61, %v6172_v22 }
 0x216   : > { %v6366_v2 = vadd.f32 %v4522_v24, %v2788_v7 }
 0x217   : > { %v6370_v62 = vadd.f32 %v4526_v34, %v2790_v31  ;;  %v6722_v31 = vld [vmem:[#allocation29_spill] sm:$0xff] }
 0x218   : > { %v2226_v47 = vadd.f32 %v6722_v31, %v6169_v63  ;;  %v6729_v31 = vld [vmem:[#allocation5_spill] sm:$0xff] }
 0x219   : > { %v2601_v54 = vpop.f32.mrb[56].mxu0  ;;  %v2076_v33 = vadd.f32 %v6729_v31, %v6169_v63 }
 0x21a   : > { %v4530_v55 = vadd.f32 %v2601_v54, %v2216_v57  ;;  %v2603_v6 = vpop.f32.mrb[57].mxu0 }
 0x21b   : > { %v4534_v16 = vadd.f32 %v2603_v6, %v2218_v50  ;;  %v2605_v23 = vpop.f32.mrb[58].mxu0  ;;  %v6724_v50 = vld [vmem:[#allocation31_spill] sm:$0xff] }
 0x21c   : > { %v4538_v32 = vadd.f32 %v2605_v23, %v2220_v38  ;;  %v6376_v4 = vadd.f32 %v4530_v55, %v2794_v28  ;;  %v2607_v7 = vpop.f32.mrb[59].mxu0  ;;  %v2230_v57 = vadd.f32 %v6724_v50, %v6169_v63  ;;  %v6725_v28 = vld [vmem:[#allocation32_spill] sm:$0xff]  ;;  %v6730_v50 = vld [vmem:[#allocation6_spill] sm:$0xff] }
 0x21d   : > { %v4542_v52 = vadd.f32 %v2607_v7, %v2222_v43  ;;  %v6378_v24 = vadd.f32 %v4534_v16, %v2796_v36  ;;  %v2232_v38 = vadd.f32 %v6725_v28, %v6172_v22 }
 0x21e   : > { %v6382_v34 = vadd.f32 %v4538_v32, %v2798_v41 }
 0x21f   : > { %v6386_v61 = vadd.f32 %v4542_v52, %v2800_v35 }
 0x221   : > { %v2611_v54 = vpop.f32.mrb[60].mxu0 }
 0x222   : > { %v4546_v43 = vadd.f32 %v2611_v54, %v2226_v47  ;;  %v2613_v36 = vpop.f32.mrb[61].mxu0  ;;  %v2078_v47 = vadd.f32 %v6730_v50, %v6172_v22 }
 0x223   : > { %v4550_v55 = vadd.f32 %v2613_v36, %v2228_v29  ;;  %v2615_v6 = vpop.f32.mrb[62].mxu0  ;;  %v6731_v29 = vld [vmem:[#allocation7_spill] sm:$0xff] }
 0x224   : > { %v4554_v16 = vadd.f32 %v2615_v6, %v2230_v57  ;;  %v6392_v23 = vadd.f32 %v4546_v43, %v2804_v30  ;;  %v2617_v41 = vpop.f32.mrb[63].mxu0  ;;  %v2080_v57 = vadd.f32 %v6731_v29, %v6169_v63  ;;  %v6734_v29 = vld [vmem:[#allocation10_spill] sm:$0xff] }
 0x225   : > { %v4558_v32 = vadd.f32 %v2617_v41, %v2232_v38  ;;  %v6394_v7 = vadd.f32 %v4550_v55, %v2806_v8  ;;  %v6732_v38 = vld [vmem:[#allocation8_spill] sm:$0xff]  ;;  %v5128_v55 = vld [vmem:[%s6672_s5] sm:$0xff]  }
 0x226   : > { %v6396_v35 = vadd.f32 %v4554_v16, %v2808_v19  ;;  %v2082_v8 = vadd.f32 %v6732_v38, %v6172_v22  ;;  %4257 = vmatprep.subr.bf16.mxu1 %v5128_v55  ;;  %v6735_v38 = vld [vmem:[#allocation11_spill] sm:$0xff] }
 0x227   : > { %6726 = vst [vmem:[#allocation23_spill] sm:$0xff] %v6394_v7  ;;  %v6398_v52 = vadd.f32 %v4558_v32, %v2810_v15  ;;  %v6742_v7 = vld [vmem:[#allocation18_spill] sm:$0xff] }
 0x228   : > { %6727 = vst [vmem:[#allocation24_spill] sm:$0xff] %v6396_v35 }
 0x229   : > { %6728 = vst [vmem:[#allocation25_spill] sm:$0xff] %v6398_v52 }
 0x249   : > { %v2847_v28 = vpop.f32.mrb[0].mxu0 }
 0x24a   : > { %v4338_v30 = vadd.f32 %v2847_v28, %v2076_v33  ;;  %v2849_v54 = vpop.f32.mrb[1].mxu0  ;;  %v6733_v33 = vld [vmem:[#allocation9_spill] sm:$0xff] }
 0x24b   : > { %v4340_v43 = vadd.f32 %v2849_v54, %v2078_v47  ;;  %v2851_v19 = vpop.f32.mrb[2].mxu0  ;;  %v2086_v50 = vadd.f32 %v6733_v33, %v6169_v63  ;;  %v2088_v47 = vadd.f32 %v6734_v29, %v6172_v22  ;;  %v5130_v33 = vld [vmem:[%s6672_s5 + $0x10] sm:$0xff]  }
 0x24c   : > { %v4342_v36 = vadd.f32 %v2851_v19, %v2080_v57  ;;  %v2853_v15 = vpop.f32.mrb[3].mxu0  ;;  %v3006_v16 = vmax.f32 %v4338_v30, 0.0  ;;  %v2090_v19 = vadd.f32 %v6735_v38, %v6169_v63  ;;  %v5129_v30 = vld [vmem:[%s6672_s5 + $0x8] sm:$0xff]  }
 0x24d   : > { %v4344_v6 = vadd.f32 %v2853_v15, %v2082_v8  ;;  %v3007_v32 = vmax.f32 %v4340_v43, 0.0  ;;  %v6736_v8 = vld [vmem:[#allocation12_spill] sm:$0xff] }
 0x24e   : > { %v3008_v41 = vmax.f32 %v4342_v36, 0.0  ;;  %v2092_v43 = vadd.f32 %v6736_v8, %v6172_v22 }
 0x24f   : > { %v3009_v31 = vmax.f32 %v4344_v6, 0.0 }
 0x250   : > { %v3070_v28 = vpack.c.bf16 %v3008_v41, %v3006_v16 }
 0x251   : > { %v3071_v54 = vpack.c.bf16 %v3009_v31, %v3007_v32  ;;  %v2857_v57 = vpop.f32.mrb[4].mxu0 }
 0x252   : > { %v4346_v52 = vadd.f32 %v2857_v57, %v2086_v50  ;;  %v2859_v35 = vpop.f32.mrb[5].mxu0  ;;  %v6737_v57 = vld [vmem:[#allocation13_spill] sm:$0xff] }
 0x253   : > { %v4348_v36 = vadd.f32 %v2859_v35, %v2088_v47  ;;  %v2861_v15 = vpop.f32.mrb[6].mxu0  ;;  %3269 = vmatprep.mubr.bf16.mxu1 %v3071_v54  ;;  %v2096_v38 = vadd.f32 %v6737_v57, %v6169_v63  ;;  %v6738_v47 = vld [vmem:[#allocation14_spill] sm:$0xff] }
 0x254   : > { %v4350_v6 = vadd.f32 %v2861_v15, %v2090_v19  ;;  %v2863_v16 = vpop.f32.mrb[7].mxu0  ;;  %3270 = vmatmul.mubr.bf16.vlgmr.msra.gmra.mrb[112].mxu1 %v3070_v28  ;;  %v3010_v32 = vmax.f32 %v4346_v52, 0.0  ;;  %v2098_v54 = vadd.f32 %v6738_v47, %v6172_v22  ;;  %v6739_v52 = vld [vmem:[#allocation15_spill] sm:$0xff]  ;;  %v6740_v15 = vld [vmem:[#allocation16_spill] sm:$0xff]  ;;  %v6741_v47 = vld [vmem:[#allocation17_spill] sm:$0xff] }
 0x255   : > { %v4352_v41 = vadd.f32 %v2863_v16, %v2092_v43  ;;  %4258 = vmatpush3.bf16.msra.mxu1 %v5128_v55  ;;  %v3011_v50 = vmax.f32 %v4348_v36, 0.0  ;;  %v2100_v55 = vadd.f32 %v6739_v52, %v6169_v63  ;;  %v5131_v36 = vld [vmem:[%s6672_s5 + $0x18] sm:$0xff]  }
 0x256   : > { %v3012_v31 = vmax.f32 %v4350_v6, 0.0  ;;  %4259 = vmatprep.subr.bf16.mxu1 %v5129_v30  ;;  %v2102_v6 = vadd.f32 %v6740_v15, %v6172_v22  ;;  %v2108_v15 = vadd.f32 %v6742_v7, %v6172_v22 }
 0x257   : > { %v3013_v29 = vmax.f32 %v4352_v41, 0.0 }
 0x258   : > { %v3072_v35 = vpack.c.bf16 %v3012_v31, %v3010_v32 }
 0x259   : > { %v3073_v19 = vpack.c.bf16 %v3013_v29, %v3011_v50  ;;  %v2867_v28 = vpop.f32.mrb[8].mxu0  ;;  %4260 = vmatpush3.bf16.msra.mxu1 %v5129_v30 }
 0x25a   : > { %v4354_v8 = vadd.f32 %v2867_v28, %v2096_v38  ;;  %v2869_v43 = vpop.f32.mrb[9].mxu0  ;;  %4261 = vmatprep.subr.bf16.mxu1 %v5130_v33  ;;  %v2106_v28 = vadd.f32 %v6741_v47, %v6169_v63 }
 0x25b   : > { %v4356_v16 = vadd.f32 %v2869_v43, %v2098_v54  ;;  %v2871_v41 = vpop.f32.mrb[10].mxu0  ;;  %3277 = vmatprep.mubr.bf16.mxu1 %v3073_v19  ;;  %v6743_v19 = vld [vmem:[#allocation19_spill] sm:$0xff] }
 0x25c   : > { %v4358_v32 = vadd.f32 %v2871_v41, %v2100_v55  ;;  %v2873_v31 = vpop.f32.mrb[11].mxu0  ;;  %3278 = vmatmul.mubr.bf16.gmra.mrb[116].mxu1 %v3072_v35  ;;  %v3014_v50 = vmax.f32 %v4354_v8, 0.0  ;;  %v2110_v35 = vadd.f32 %v6743_v19, %v6169_v63  ;;  %v6744_v8 = vld [vmem:[#allocation20_spill] sm:$0xff] }
 0x25d   : > { %v4360_v30 = vadd.f32 %v2873_v31, %v2102_v6  ;;  %4262 = vmatpush3.bf16.msra.mxu1 %v5130_v33  ;;  %v3015_v57 = vmax.f32 %v4356_v16, 0.0  ;;  %v2112_v6 = vadd.f32 %v6744_v8, %v6172_v22 }
 0x25e   : > { %v3016_v29 = vmax.f32 %v4358_v32, 0.0  ;;  %4263 = vmatprep.subr.bf16.mxu1 %v5131_v36 }
 0x25f   : > { %v3017_v38 = vmax.f32 %v4360_v30, 0.0 }
 0x260   : > { %v3074_v52 = vpack.c.bf16 %v3016_v29, %v3014_v50 }
 0x261   : > { %v3075_v54 = vpack.c.bf16 %v3017_v38, %v3015_v57  ;;  %v2877_v43 = vpop.f32.mrb[12].mxu0  ;;  %4264 = vmatpush3.bf16.msra.mxu1 %v5131_v36 }
 0x262   : > { %v4362_v55 = vadd.f32 %v2877_v43, %v2106_v28  ;;  %v2879_v33 = vpop.f32.mrb[13].mxu0 }
 0x263   : > { %v4364_v16 = vadd.f32 %v2879_v33, %v2108_v15  ;;  %v2881_v41 = vpop.f32.mrb[14].mxu0  ;;  %3285 = vmatprep.mubr.bf16.mxu1 %v3075_v54 }
 0x264   : > { %v4366_v32 = vadd.f32 %v2881_v41, %v2110_v35  ;;  %v2883_v31 = vpop.f32.mrb[15].mxu0  ;;  %3286 = vmatmul.mubr.bf16.gmra.mrb[120].mxu1 %v3074_v52  ;;  %v3018_v50 = vmax.f32 %v4362_v55, 0.0  ;;  %v6745_v52 = vld [vmem:[#allocation33_spill] sm:$0xff] }
 0x265   : > { %v4368_v30 = vadd.f32 %v2883_v31, %v2112_v6  ;;  %v3019_v29 = vmax.f32 %v4364_v16, 0.0 }
 0x266   : > { %v3020_v7 = vmax.f32 %v4366_v32, 0.0 }
 0x267   : > { %v3021_v57 = vmax.f32 %v4368_v30, 0.0 }
 0x268   : > { %v3076_v36 = vpack.c.bf16 %v3020_v7, %v3018_v50 }
 0x269   : > { %v3077_v38 = vpack.c.bf16 %v3021_v57, %v3019_v29  ;;  %v2887_v47 = vpop.f32.mrb[64].mxu0 }
 0x26a   : > { %v4372_v63 = vadd.f32 %v6193_v17, %v2887_v47  ;;  %v2889_v28 = vpop.f32.mrb[65].mxu0 }
 0x26b   : > { %v4376_v43 = vadd.f32 %v6198_v58, %v2889_v28  ;;  %v2891_v22 = vpop.f32.mrb[66].mxu0  ;;  %3293 = vmatprep.mubr.bf16.mxu1 %v3077_v38 }
 0x26c   : > { %v4380_v15 = vadd.f32 %v6202_v11, %v2891_v22  ;;  %v2893_v54 = vpop.f32.mrb[67].mxu0  ;;  %3294 = vmatmul.mubr.bf16.gmra.mrb[124].mxu1 %v3076_v36  ;;  %v3022_v35 = vmax.f32 %v4372_v63, 0.0 }
 0x26d   : > { %v4384_v19 = vadd.f32 %v6745_v52, %v2893_v54  ;;  %v3023_v33 = vmax.f32 %v4376_v43, 0.0 }
 0x26e   : > { %v3024_v55 = vmax.f32 %v4380_v15, 0.0 }
 0x26f   : > { %v3025_v8 = vmax.f32 %v4384_v19, 0.0 }
 0x270   : > { %v3078_v6 = vpack.c.bf16 %v3024_v55, %v3022_v35 }
 0x271   : > { %v3079_v16 = vpack.c.bf16 %v3025_v8, %v3023_v33  ;;  %v2897_v41 = vpop.f32.mrb[68].mxu0 }
 0x272   : > { %v4388_v17 = vadd.f32 %v6217_v13, %v2897_v41  ;;  %v2899_v32 = vpop.f32.mrb[69].mxu0 }
 0x273   : > { %v4392_v58 = vadd.f32 %v6219_v60, %v2899_v32  ;;  %v2901_v31 = vpop.f32.mrb[70].mxu0  ;;  %3301 = vmatprep.mubr.bf16.mxu1 %v3079_v16 }
 0x274   : > { %v4396_v11 = vadd.f32 %v6223_v12, %v2901_v31  ;;  %v2903_v30 = vpop.f32.mrb[71].mxu0  ;;  %3302 = vmatmul.mubr.bf16.gmra.mrb[128].mxu1 %v3078_v6  ;;  %v3026_v7 = vmax.f32 %v4388_v17, 0.0 }
 0x275   : > { %v4400_v50 = vadd.f32 %v6228_v20, %v2903_v30  ;;  %v3027_v57 = vmax.f32 %v4392_v58, 0.0 }
 0x276   : > { %v3028_v29 = vmax.f32 %v4396_v11, 0.0 }
 0x277   : > { %v3029_v36 = vmax.f32 %v4400_v50, 0.0 }
 0x278   : > { %v3080_v38 = vpack.c.bf16 %v3028_v29, %v3026_v7 }
 0x279   : > { %v3081_v47 = vpack.c.bf16 %v3029_v36, %v3027_v57  ;;  %v2907_v63 = vpop.f32.mrb[72].mxu0 }
 0x27a   : > { %v4404_v13 = vadd.f32 %v6237_v1, %v2907_v63  ;;  %v2909_v28 = vpop.f32.mrb[73].mxu0 }
 0x27b   : > { %v4408_v60 = vadd.f32 %v6240_v0, %v2909_v28  ;;  %v2911_v43 = vpop.f32.mrb[74].mxu0  ;;  %3309 = vmatprep.mubr.bf16.mxu1 %v3081_v47 }
 0x27c   : > { %v4412_v12 = vadd.f32 %v6245_v37, %v2911_v43  ;;  %v2913_v22 = vpop.f32.mrb[75].mxu0  ;;  %3310 = vmatmul.mubr.bf16.gmra.mrb[132].mxu1 %v3080_v38  ;;  %v3030_v15 = vmax.f32 %v4404_v13, 0.0 }
 0x27d   : > { %v4416_v20 = vadd.f32 %v6251_v25, %v2913_v22  ;;  %v3031_v52 = vmax.f32 %v4408_v60, 0.0 }
 0x27e   : > { %v3032_v54 = vmax.f32 %v4412_v12, 0.0 }
 0x27f   : > { %v3033_v19 = vmax.f32 %v4416_v20, 0.0 }
 0x280   : > { %v3082_v35 = vpack.c.bf16 %v3032_v54, %v3030_v15 }
 0x281   : > { %v3083_v55 = vpack.c.bf16 %v3033_v19, %v3031_v52  ;;  %v2917_v33 = vpop.f32.mrb[76].mxu0 }
 0x282   : > { %v4420_v1 = vadd.f32 %v6260_v10, %v2917_v33  ;;  %v2919_v8 = vpop.f32.mrb[77].mxu0 }
 0x283   : > { %v4424_v0 = vadd.f32 %v6262_v42, %v2919_v8  ;;  %v2921_v6 = vpop.f32.mrb[78].mxu0  ;;  %3317 = vmatprep.mubr.bf16.mxu1 %v3083_v55 }
 0x284   : > { %v4428_v37 = vadd.f32 %v6266_v46, %v2921_v6  ;;  %v2923_v16 = vpop.f32.mrb[79].mxu0  ;;  %3318 = vmatmul.mubr.bf16.gmra.mrb[136].mxu1 %v3082_v35  ;;  %v3034_v41 = vmax.f32 %v4420_v1, 0.0 }
 0x285   : > { %v4432_v25 = vadd.f32 %v6271_v21, %v2923_v16  ;;  %v3035_v32 = vmax.f32 %v4424_v0, 0.0 }
 0x286   : > { %v3036_v17 = vmax.f32 %v4428_v37, 0.0 }
 0x287   : > { %v3037_v58 = vmax.f32 %v4432_v25, 0.0 }
 0x288   : > { %v3084_v31 = vpack.c.bf16 %v3036_v17, %v3034_v41 }
 0x289   : > { %v3085_v11 = vpack.c.bf16 %v3037_v58, %v3035_v32  ;;  %v2927_v30 = vpop.f32.mrb[80].mxu0 }
 0x28a   : > { %v4436_v10 = vadd.f32 %v6279_v51, %v2927_v30  ;;  %v2929_v50 = vpop.f32.mrb[81].mxu0 }
 0x28b   : > { %v4440_v42 = vadd.f32 %v6281_v5, %v2929_v50  ;;  %v2931_v7 = vpop.f32.mrb[82].mxu0  ;;  %3325 = vmatprep.mubr.bf16.mxu1 %v3085_v11 }
 0x28c   : > { %v4444_v46 = vadd.f32 %v6285_v48, %v2931_v7  ;;  %v2933_v29 = vpop.f32.mrb[83].mxu0  ;;  %3326 = vmatmul.mubr.bf16.gmra.mrb[140].mxu1 %v3084_v31  ;;  %v3038_v57 = vmax.f32 %v4436_v10, 0.0  ;;  %v6746_v31 = vld [vmem:[#allocation34_spill] sm:$0xff] }
 0x28d   : > { %v4448_v21 = vadd.f32 %v6290_v45, %v2933_v29  ;;  %v3039_v38 = vmax.f32 %v4440_v42, 0.0 }
 0x28e   : > { %v3040_v36 = vmax.f32 %v4444_v46, 0.0 }
 0x28f   : > { %v3041_v47 = vmax.f32 %v4448_v21, 0.0 }
 0x290   : > { %v3086_v63 = vpack.c.bf16 %v3040_v36, %v3038_v57  ;;  %v6748_v57 = vld [vmem:[#allocation36_spill] sm:$0xff] }
 0x291   : > { %v3087_v13 = vpack.c.bf16 %v3041_v47, %v3039_v38  ;;  %v2937_v28 = vpop.f32.mrb[84].mxu0  ;;  %v6749_v38 = vld [vmem:[#allocation21_spill] sm:$0xff] }
 0x292   : > { %v4452_v51 = vadd.f32 %v6296_v44, %v2937_v28  ;;  %v2939_v60 = vpop.f32.mrb[85].mxu0 }
 0x293   : > { %v4456_v5 = vadd.f32 %v6298_v9, %v2939_v60  ;;  %v2941_v43 = vpop.f32.mrb[86].mxu0  ;;  %3333 = vmatprep.mubr.bf16.mxu1 %v3087_v13  ;;  %v6750_v13 = vld [vmem:[#allocation22_spill] sm:$0xff] }
 0x294   : > { %v4460_v48 = vadd.f32 %v6302_v53, %v2941_v43  ;;  %v2943_v12 = vpop.f32.mrb[87].mxu0  ;;  %3334 = vmatmul.mubr.bf16.gmra.mrb[144].mxu1 %v3086_v63  ;;  %v3042_v22 = vmax.f32 %v4452_v51, 0.0  ;;  %v5133_v51 = vld [vmem:[%s6672_s5 + $0x28] sm:$0xff]  }
 0x295   : > { %v4464_v45 = vadd.f32 %v6306_v49, %v2943_v12  ;;  %v3043_v15 = vmax.f32 %v4456_v5, 0.0 }
 0x296   : > { %v3044_v20 = vmax.f32 %v4460_v48, 0.0 }
 0x297   : > { %v3045_v54 = vmax.f32 %v4464_v45, 0.0 }
 0x298   : > { %v3088_v52 = vpack.c.bf16 %v3044_v20, %v3042_v22  ;;  %v5134_v20 = vld [vmem:[%s6672_s5 + $0x30] sm:$0xff]  }
 0x299   : > { %v3089_v19 = vpack.c.bf16 %v3045_v54, %v3043_v15  ;;  %v2947_v35 = vpop.f32.mrb[88].mxu0 }
 0x29a   : > { %v4468_v44 = vadd.f32 %v6312_v39, %v2947_v35  ;;  %v2949_v55 = vpop.f32.mrb[89].mxu0 }
 0x29b   : > { %v4472_v9 = vadd.f32 %v6314_v3, %v2949_v55  ;;  %v2951_v33 = vpop.f32.mrb[90].mxu0  ;;  %3341 = vmatprep.mubr.bf16.mxu1 %v3089_v19 }
 0x29c   : > { %v4476_v53 = vadd.f32 %v6318_v56, %v2951_v33  ;;  %v2953_v1 = vpop.f32.mrb[91].mxu0  ;;  %3342 = vmatmul.mubr.bf16.gmra.mrb[148].mxu1 %v3088_v52  ;;  %v3046_v8 = vmax.f32 %v4468_v44, 0.0 }
 0x29d   : > { %v4480_v49 = vadd.f32 %v6322_v18, %v2953_v1  ;;  %v3047_v6 = vmax.f32 %v4472_v9, 0.0  ;;  %v5135_v9 = vld [vmem:[%s6672_s5 + $0x38] sm:$0xff]  }
 0x29e   : > { %v3048_v0 = vmax.f32 %v4476_v53, 0.0 }
 0x29f   : > { %v3049_v37 = vmax.f32 %v4480_v49, 0.0 }
 0x2a0   : > { %v3090_v16 = vpack.c.bf16 %v3048_v0, %v3046_v8 }
 0x2a1   : > { %v3091_v25 = vpack.c.bf16 %v3049_v37, %v3047_v6  ;;  %v2957_v41 = vpop.f32.mrb[92].mxu0 }
 0x2a2   : > { %v4484_v39 = vadd.f32 %v6328_v40, %v2957_v41  ;;  %v2959_v17 = vpop.f32.mrb[93].mxu0  ;;  %v5132_v40 = vld [vmem:[%s6672_s5 + $0x20] sm:$0xff]  }
 0x2a3   : > { %v4488_v3 = vadd.f32 %v6330_v27, %v2959_v17  ;;  %v2961_v32 = vpop.f32.mrb[94].mxu0  ;;  %3349 = vmatprep.mubr.bf16.mxu1 %v3091_v25  ;;  %v6747_v27 = vld [vmem:[#allocation35_spill] sm:$0xff]  ;;  %4265 = vmatprep.subr.bf16.mxu1 %v5132_v40 }
 0x2a4   : > { %v4492_v56 = vadd.f32 %v6334_v14, %v2961_v32  ;;  %v2963_v58 = vpop.f32.mrb[95].mxu0  ;;  %3350 = vmatmul.mubr.bf16.gmra.mrb[152].mxu1 %v3090_v16  ;;  %v3050_v11 = vmax.f32 %v4484_v39, 0.0 }
 0x2a5   : > { %v4496_v18 = vadd.f32 %v6746_v31, %v2963_v58  ;;  %v3051_v10 = vmax.f32 %v4488_v3, 0.0  ;;  %4266 = vmatpush3.bf16.msra.mxu1 %v5132_v40 }
 0x2a6   : > { %v3052_v30 = vmax.f32 %v4492_v56, 0.0  ;;  %4267 = vmatprep.subr.bf16.mxu1 %v5133_v51 }
 0x2a7   : > { %v3053_v50 = vmax.f32 %v4496_v18, 0.0  ;;  %v6751_v18 = vld [vmem:[#allocation23_spill] sm:$0xff] }
 0x2a8   : > { %v3092_v42 = vpack.c.bf16 %v3052_v30, %v3050_v11  ;;  %v6752_v30 = vld [vmem:[#allocation24_spill] sm:$0xff] }
 0x2a9   : > { %v3093_v7 = vpack.c.bf16 %v3053_v50, %v3051_v10  ;;  %v2967_v46 = vpop.f32.mrb[96].mxu0  ;;  %4268 = vmatpush3.bf16.msra.mxu1 %v5133_v51  ;;  %v6753_v50 = vld [vmem:[#allocation25_spill] sm:$0xff] }
 0x2aa   : > { %v4500_v29 = vadd.f32 %v6747_v27, %v2967_v46  ;;  %v2969_v21 = vpop.f32.mrb[97].mxu0  ;;  %4269 = vmatprep.subr.bf16.mxu1 %v5134_v20 }
 0x2ab   : > { %v4504_v14 = vadd.f32 %v6748_v57, %v2969_v21  ;;  %v2971_v36 = vpop.f32.mrb[98].mxu0  ;;  %3357 = vmatprep.mubr.bf16.mxu1 %v3093_v7  ;;  %v6507_v21 = vld [vmem:[%s6671_s4] ss:$0 sm:$0xff] }
 0x2ac   : > { %v4508_v47 = vadd.f32 %v6749_v38, %v2971_v36  ;;  %v2973_v63 = vpop.f32.mrb[99].mxu0  ;;  %3358 = vmatmul.mubr.bf16.gmra.mrb[156].mxu1 %v3092_v42  ;;  %v3054_v60 = vmax.f32 %v4500_v29, 0.0 }
 0x2ad   : > { %v4512_v28 = vadd.f32 %v6750_v13, %v2973_v63  ;;  %v3055_v43 = vmax.f32 %v4504_v14, 0.0  ;;  %4270 = vmatpush3.bf16.msra.mxu1 %v5134_v20 }
 0x2ae   : > { %v3056_v5 = vmax.f32 %v4508_v47, 0.0  ;;  %4271 = vmatprep.subr.bf16.mxu1 %v5135_v9 }
 0x2af   : > { %v3057_v48 = vmax.f32 %v4512_v28, 0.0 }
 0x2b0   : > { %v3094_v12 = vpack.c.bf16 %v3056_v5, %v3054_v60 }
 0x2b1   : > { %v3095_v45 = vpack.c.bf16 %v3057_v48, %v3055_v43  ;;  %v2977_v22 = vpop.f32.mrb[100].mxu0  ;;  %4272 = vmatpush3.bf16.msra.mxu1 %v5135_v9 }
 0x2b2   : > { %v4516_v15 = vadd.f32 %v6360_v26, %v2977_v22  ;;  %v2979_v54 = vpop.f32.mrb[101].mxu0 }
 0x2b3   : > { %v4520_v52 = vadd.f32 %v6362_v59, %v2979_v54  ;;  %v2981_v19 = vpop.f32.mrb[102].mxu0  ;;  %3365 = vmatprep.mubr.bf16.mxu1 %v3095_v45 }
 0x2b4   : > { %v4524_v35 = vadd.f32 %v6366_v2, %v2981_v19  ;;  %v2983_v44 = vpop.f32.mrb[103].mxu0  ;;  %3366 = vmatmul.mubr.bf16.gmra.mrb[160].mxu1 %v3094_v12  ;;  %v3058_v33 = vmax.f32 %v4516_v15, 0.0 }
 0x2b5   : > { %v4528_v55 = vadd.f32 %v6370_v62, %v2983_v44  ;;  %v3059_v26 = vmax.f32 %v4520_v52, 0.0 }
 0x2b6   : > { %v3060_v53 = vmax.f32 %v4524_v35, 0.0 }
 0x2b7   : > { %v3061_v1 = vmax.f32 %v4528_v55, 0.0 }
 0x2b8   : > { %v3096_v59 = vpack.c.bf16 %v3060_v53, %v3058_v33 }
 0x2b9   : > { %v3097_v49 = vpack.c.bf16 %v3061_v1, %v3059_v26  ;;  %v2987_v8 = vpop.f32.mrb[104].mxu0 }
 0x2ba   : > { %v4532_v2 = vadd.f32 %v6376_v4, %v2987_v8  ;;  %v2989_v0 = vpop.f32.mrb[105].mxu0 }
 0x2bb   : > { %v4536_v6 = vadd.f32 %v6378_v24, %v2989_v0  ;;  %v2991_v62 = vpop.f32.mrb[106].mxu0  ;;  %3373 = vmatprep.mubr.bf16.mxu1 %v3097_v49 }
 0x2bc   : > { %v4540_v37 = vadd.f32 %v6382_v34, %v2991_v62  ;;  %v2993_v16 = vpop.f32.mrb[107].mxu0  ;;  %3374 = vmatmul.mubr.bf16.gmra.mrb[164].mxu1 %v3096_v59  ;;  %v3062_v41 = vmax.f32 %v4532_v2, 0.0 }
 0x2bd   : > { %v4544_v25 = vadd.f32 %v6386_v61, %v2993_v16  ;;  %v3063_v17 = vmax.f32 %v4536_v6, 0.0 }
 0x2be   : > { %v3064_v39 = vmax.f32 %v4540_v37, 0.0 }
 0x2bf   : > { %v3065_v3 = vmax.f32 %v4544_v25, 0.0 }
 0x2c0   : > { %v3098_v32 = vpack.c.bf16 %v3064_v39, %v3062_v41 }
 0x2c1   : > { %v3099_v56 = vpack.c.bf16 %v3065_v3, %v3063_v17  ;;  %v2997_v58 = vpop.f32.mrb[108].mxu0 }
 0x2c2   : > { %v4548_v4 = vadd.f32 %v6392_v23, %v2997_v58  ;;  %v2999_v31 = vpop.f32.mrb[109].mxu0 }
 0x2c3   : > { %v4552_v24 = vadd.f32 %v6751_v18, %v2999_v31  ;;  %v3001_v11 = vpop.f32.mrb[110].mxu0  ;;  %3381 = vmatprep.mubr.bf16.mxu1 %v3099_v56 }
 0x2c4   : > { %v4556_v34 = vadd.f32 %v6752_v30, %v3001_v11  ;;  %v3003_v10 = vpop.f32.mrb[111].mxu0  ;;  %3382 = vmatmul.mubr.bf16.gmra.mrb[168].mxu1 %v3098_v32  ;;  %v3066_v42 = vmax.f32 %v4548_v4, 0.0 }
 0x2c5   : > { %v4560_v61 = vadd.f32 %v6753_v50, %v3003_v10  ;;  %v3067_v46 = vmax.f32 %v4552_v24, 0.0 }
 0x2c6   : > { %v3068_v7 = vmax.f32 %v4556_v34, 0.0 }
 0x2c7   : > { %v3069_v40 = vmax.f32 %v4560_v61, 0.0 }
 0x2c8   : > { %v3100_v27 = vpack.c.bf16 %v3068_v7, %v3066_v42 }
 0x2c9   : > { %v3101_v29 = vpack.c.bf16 %v3069_v40, %v3067_v46 }
 0x2cb   : > { %3389 = vmatprep.mubr.bf16.mxu1 %v3101_v29 }
 0x2cc   : > { %3390 = vmatmul.mubr.bf16.gmra.mrb[172].mxu1 %v3100_v27 }
 0x327   : > { %v4137_v23 = vpop.f32.mrb[112].mxu1 }
 0x328   : > { %v4138_v57 = vpop.f32.mrb[113].mxu1 }
 0x329   : > { %v4139_v14 = vadd.f32 %v4138_v57, %v4137_v23  ;;  %v4140_v36 = vpop.f32.mrb[114].mxu1 }
 0x32a   : > { %v4141_v38 = vpop.f32.mrb[115].mxu1 }
 0x32b   : > { %v3272_v47 = vadd.f32 %v4139_v14, %v6507_v21  ;;  %v4142_v63 = vadd.f32 %v4141_v38, %v4140_v36 }
 0x32d   : > { %v3275_v13 = vadd.f32 %v4142_v63, %v6507_v21  ;;  %v3398_v28 = vmax.f32 %v3272_v47, 0.0 }
 0x32f   : > { %v3399_v51 = vmax.f32 %v3275_v13, 0.0  ;;  %v4143_v60 = vpop.f32.mrb[116].mxu1 }
 0x330   : > { %v4144_v5 = vpop.f32.mrb[117].mxu1 }
 0x331   : > { %v4145_v43 = vadd.f32 %v4144_v5, %v4143_v60  ;;  %v4146_v48 = vpop.f32.mrb[118].mxu1  ;;  %v3430_v12 = vpack.c.bf16 %v3399_v51, %v3398_v28 }
 0x332   : > { %v4147_v45 = vpop.f32.mrb[119].mxu1 }
 0x333   : > { %v3280_v22 = vadd.f32 %v4145_v43, %v6507_v21  ;;  %v4148_v20 = vadd.f32 %v4147_v45, %v4146_v48  ;;  %4273 = vmatprep.mubr.bf16.mxu1 %v3430_v12 }
 0x335   : > { %v3283_v15 = vadd.f32 %v4148_v20, %v6507_v21  ;;  %v3400_v54 = vmax.f32 %v3280_v22, 0.0 }
 0x337   : > { %v3401_v52 = vmax.f32 %v3283_v15, 0.0  ;;  %v4149_v19 = vpop.f32.mrb[120].mxu1 }
 0x338   : > { %v4150_v35 = vpop.f32.mrb[121].mxu1 }
 0x339   : > { %v3431_v44 = vpack.c.bf16 %v3401_v52, %v3400_v54  ;;  %v4151_v55 = vadd.f32 %v4150_v35, %v4149_v19  ;;  %v4152_v9 = vpop.f32.mrb[122].mxu1 }
 0x33a   : > { %v4153_v33 = vpop.f32.mrb[123].mxu1 }
 0x33b   : > { %v3288_v53 = vadd.f32 %v4151_v55, %v6507_v21  ;;  %v4154_v26 = vadd.f32 %v4153_v33, %v4152_v9  ;;  %4274 = vmatmul.mubr.bf16.vlgmr.msra.gmra.mrb[176].mxu1 %v3431_v44 }
 0x33d   : > { %v3291_v1 = vadd.f32 %v4154_v26, %v6507_v21  ;;  %v3402_v59 = vmax.f32 %v3288_v53, 0.0 }
 0x33f   : > { %v3403_v49 = vmax.f32 %v3291_v1, 0.0  ;;  %v4155_v8 = vpop.f32.mrb[124].mxu1 }
 0x340   : > { %v4156_v2 = vpop.f32.mrb[125].mxu1 }
 0x341   : > { %v4157_v0 = vadd.f32 %v4156_v2, %v4155_v8  ;;  %v4158_v6 = vpop.f32.mrb[126].mxu1  ;;  %v3432_v62 = vpack.c.bf16 %v3403_v49, %v3402_v59 }
 0x342   : > { %v4159_v37 = vpop.f32.mrb[127].mxu1 }
 0x343   : > { %v3296_v16 = vadd.f32 %v4157_v0, %v6507_v21  ;;  %v4160_v25 = vadd.f32 %v4159_v37, %v4158_v6  ;;  %4277 = vmatprep.mubr.bf16.mxu1 %v3432_v62 }
 0x345   : > { %v3299_v41 = vadd.f32 %v4160_v25, %v6507_v21  ;;  %v3404_v39 = vmax.f32 %v3296_v16, 0.0 }
 0x347   : > { %v3405_v17 = vmax.f32 %v3299_v41, 0.0  ;;  %v4161_v3 = vpop.f32.mrb[128].mxu1 }
 0x348   : > { %v4162_v32 = vpop.f32.mrb[129].mxu1 }
 0x349   : > { %v4163_v56 = vadd.f32 %v4162_v32, %v4161_v3  ;;  %v4164_v58 = vpop.f32.mrb[130].mxu1  ;;  %v3433_v4 = vpack.c.bf16 %v3405_v17, %v3404_v39 }
 0x34a   : > { %v4165_v31 = vpop.f32.mrb[131].mxu1 }
 0x34b   : > { %v3304_v18 = vadd.f32 %v4163_v56, %v6507_v21  ;;  %v4166_v24 = vadd.f32 %v4165_v31, %v4164_v58  ;;  %4278 = vmatmul.mubr.bf16.gmra.mrb[180].mxu1 %v3433_v4 }
 0x34d   : > { %v3307_v11 = vadd.f32 %v4166_v24, %v6507_v21  ;;  %v3406_v30 = vmax.f32 %v3304_v18, 0.0 }
 0x34f   : > { %v3407_v34 = vmax.f32 %v3307_v11, 0.0  ;;  %v4167_v10 = vpop.f32.mrb[132].mxu1 }
 0x350   : > { %v4168_v50 = vpop.f32.mrb[133].mxu1 }
 0x351   : > { %v4169_v61 = vadd.f32 %v4168_v50, %v4167_v10  ;;  %v4170_v42 = vpop.f32.mrb[134].mxu1  ;;  %v3434_v7 = vpack.c.bf16 %v3407_v34, %v3406_v30 }
 0x352   : > { %v4171_v46 = vpop.f32.mrb[135].mxu1 }
 0x353   : > { %v3312_v40 = vadd.f32 %v4169_v61, %v6507_v21  ;;  %v4172_v27 = vadd.f32 %v4171_v46, %v4170_v42  ;;  %4281 = vmatprep.mubr.bf16.mxu1 %v3434_v7 }
 0x355   : > { %v3315_v29 = vadd.f32 %v4172_v27, %v6507_v21  ;;  %v3408_v23 = vmax.f32 %v3312_v40, 0.0 }
 0x357   : > { %v3409_v57 = vmax.f32 %v3315_v29, 0.0  ;;  %v4173_v14 = vpop.f32.mrb[136].mxu1 }
 0x358   : > { %v4174_v36 = vpop.f32.mrb[137].mxu1 }
 0x359   : > { %v4175_v38 = vadd.f32 %v4174_v36, %v4173_v14  ;;  %v4176_v47 = vpop.f32.mrb[138].mxu1  ;;  %v3435_v63 = vpack.c.bf16 %v3409_v57, %v3408_v23 }
 0x35a   : > { %v4177_v13 = vpop.f32.mrb[139].mxu1 }
 0x35b   : > { %v3320_v28 = vadd.f32 %v4175_v38, %v6507_v21  ;;  %v4178_v51 = vadd.f32 %v4177_v13, %v4176_v47  ;;  %4282 = vmatmul.mubr.bf16.gmra.mrb[184].mxu1 %v3435_v63 }
 0x35d   : > { %v3323_v60 = vadd.f32 %v4178_v51, %v6507_v21  ;;  %v3410_v5 = vmax.f32 %v3320_v28, 0.0 }
 0x35f   : > { %v3411_v43 = vmax.f32 %v3323_v60, 0.0  ;;  %v4179_v48 = vpop.f32.mrb[140].mxu1 }
 0x360   : > { %v4180_v12 = vpop.f32.mrb[141].mxu1 }
 0x361   : > { %v4181_v45 = vadd.f32 %v4180_v12, %v4179_v48  ;;  %v4182_v22 = vpop.f32.mrb[142].mxu1  ;;  %v3436_v20 = vpack.c.bf16 %v3411_v43, %v3410_v5 }
 0x362   : > { %v4183_v15 = vpop.f32.mrb[143].mxu1 }
 0x363   : > { %v3328_v54 = vadd.f32 %v4181_v45, %v6507_v21  ;;  %v4184_v52 = vadd.f32 %v4183_v15, %v4182_v22  ;;  %4285 = vmatprep.mubr.bf16.mxu1 %v3436_v20 }
 0x365   : > { %v3331_v19 = vadd.f32 %v4184_v52, %v6507_v21  ;;  %v3412_v35 = vmax.f32 %v3328_v54, 0.0 }
 0x367   : > { %v3413_v44 = vmax.f32 %v3331_v19, 0.0  ;;  %v4185_v55 = vpop.f32.mrb[144].mxu1 }
 0x368   : > { %v4186_v9 = vpop.f32.mrb[145].mxu1 }
 0x369   : > { %v4187_v33 = vadd.f32 %v4186_v9, %v4185_v55  ;;  %v4188_v53 = vpop.f32.mrb[146].mxu1  ;;  %v3437_v26 = vpack.c.bf16 %v3413_v44, %v3412_v35 }
 0x36a   : > { %v4189_v1 = vpop.f32.mrb[147].mxu1 }
 0x36b   : > { %v3336_v59 = vadd.f32 %v4187_v33, %v6507_v21  ;;  %v4190_v49 = vadd.f32 %v4189_v1, %v4188_v53  ;;  %4286 = vmatmul.mubr.bf16.gmra.mrb[188].mxu1 %v3437_v26 }
 0x36d   : > { %v3339_v8 = vadd.f32 %v4190_v49, %v6507_v21  ;;  %v3414_v2 = vmax.f32 %v3336_v59, 0.0 }
 0x36f   : > { %v3415_v0 = vmax.f32 %v3339_v8, 0.0  ;;  %v4191_v6 = vpop.f32.mrb[148].mxu1 }
 0x370   : > { %v4192_v62 = vpop.f32.mrb[149].mxu1 }
 0x371   : > { %v4193_v37 = vadd.f32 %v4192_v62, %v4191_v6  ;;  %v4194_v16 = vpop.f32.mrb[150].mxu1  ;;  %v3438_v25 = vpack.c.bf16 %v3415_v0, %v3414_v2 }
 0x372   : > { %v4195_v41 = vpop.f32.mrb[151].mxu1 }
 0x373   : > { %v3344_v39 = vadd.f32 %v4193_v37, %v6507_v21  ;;  %v4196_v17 = vadd.f32 %v4195_v41, %v4194_v16  ;;  %4289 = vmatprep.mubr.bf16.mxu1 %v3438_v25 }
 0x375   : > { %v3347_v3 = vadd.f32 %v4196_v17, %v6507_v21  ;;  %v3416_v32 = vmax.f32 %v3344_v39, 0.0 }
 0x377   : > { %v3417_v56 = vmax.f32 %v3347_v3, 0.0  ;;  %v4197_v58 = vpop.f32.mrb[152].mxu1 }
 0x378   : > { %v4198_v4 = vpop.f32.mrb[153].mxu1 }
 0x379   : > { %v4199_v31 = vadd.f32 %v4198_v4, %v4197_v58  ;;  %v4200_v18 = vpop.f32.mrb[154].mxu1  ;;  %v3439_v24 = vpack.c.bf16 %v3417_v56, %v3416_v32 }
 0x37a   : > { %v4201_v11 = vpop.f32.mrb[155].mxu1 }
 0x37b   : > { %v3352_v30 = vadd.f32 %v4199_v31, %v6507_v21  ;;  %v4202_v34 = vadd.f32 %v4201_v11, %v4200_v18  ;;  %4290 = vmatmul.mubr.bf16.gmra.mrb[192].mxu1 %v3439_v24  ;;  %v6547_v24 = vld [vmem:[%s6673_s6] ss:$0 sm:$0xff] }
 0x37d   : > { %v3355_v10 = vadd.f32 %v4202_v34, %v6507_v21  ;;  %v3418_v50 = vmax.f32 %v3352_v30, 0.0 }
 0x37f   : > { %v3419_v61 = vmax.f32 %v3355_v10, 0.0  ;;  %v4203_v42 = vpop.f32.mrb[156].mxu1 }
 0x380   : > { %v4204_v7 = vpop.f32.mrb[157].mxu1 }
 0x381   : > { %v4205_v46 = vadd.f32 %v4204_v7, %v4203_v42  ;;  %v4206_v40 = vpop.f32.mrb[158].mxu1  ;;  %v3440_v27 = vpack.c.bf16 %v3419_v61, %v3418_v50 }
 0x382   : > { %v4207_v29 = vpop.f32.mrb[159].mxu1 }
 0x383   : > { %v3360_v23 = vadd.f32 %v4205_v46, %v6507_v21  ;;  %v4208_v57 = vadd.f32 %v4207_v29, %v4206_v40  ;;  %4293 = vmatprep.mubr.bf16.mxu1 %v3440_v27 }
 0x385   : > { %v3363_v14 = vadd.f32 %v4208_v57, %v6507_v21  ;;  %v3420_v36 = vmax.f32 %v3360_v23, 0.0 }
 0x387   : > { %v3421_v38 = vmax.f32 %v3363_v14, 0.0  ;;  %v4209_v47 = vpop.f32.mrb[160].mxu1 }
 0x388   : > { %v4210_v63 = vpop.f32.mrb[161].mxu1 }
 0x389   : > { %v4211_v13 = vadd.f32 %v4210_v63, %v4209_v47  ;;  %v4212_v28 = vpop.f32.mrb[162].mxu1  ;;  %v3441_v51 = vpack.c.bf16 %v3421_v38, %v3420_v36 }
 0x38a   : > { %v4213_v60 = vpop.f32.mrb[163].mxu1 }
 0x38b   : > { %v3368_v5 = vadd.f32 %v4211_v13, %v6507_v21  ;;  %v4214_v43 = vadd.f32 %v4213_v60, %v4212_v28  ;;  %4294 = vmatmul.mubr.bf16.gmra.mrb[196].mxu1 %v3441_v51 }
 0x38d   : > { %v3371_v48 = vadd.f32 %v4214_v43, %v6507_v21  ;;  %v3422_v12 = vmax.f32 %v3368_v5, 0.0 }
 0x38f   : > { %v3423_v45 = vmax.f32 %v3371_v48, 0.0  ;;  %v4215_v22 = vpop.f32.mrb[164].mxu1 }
 0x390   : > { %v4216_v20 = vpop.f32.mrb[165].mxu1 }
 0x391   : > { %v4217_v15 = vadd.f32 %v4216_v20, %v4215_v22  ;;  %v4218_v54 = vpop.f32.mrb[166].mxu1  ;;  %v3442_v52 = vpack.c.bf16 %v3423_v45, %v3422_v12 }
 0x392   : > { %v4219_v19 = vpop.f32.mrb[167].mxu1 }
 0x393   : > { %v3376_v35 = vadd.f32 %v4217_v15, %v6507_v21  ;;  %v4220_v44 = vadd.f32 %v4219_v19, %v4218_v54  ;;  %4297 = vmatprep.mubr.bf16.mxu1 %v3442_v52 }
 0x395   : > { %v3379_v55 = vadd.f32 %v4220_v44, %v6507_v21  ;;  %v3424_v9 = vmax.f32 %v3376_v35, 0.0 }
 0x397   : > { %v3425_v33 = vmax.f32 %v3379_v55, 0.0  ;;  %v4221_v53 = vpop.f32.mrb[168].mxu1 }
 0x398   : > { %v4222_v26 = vpop.f32.mrb[169].mxu1 }
 0x399   : > { %v4223_v1 = vadd.f32 %v4222_v26, %v4221_v53  ;;  %v4224_v59 = vpop.f32.mrb[170].mxu1  ;;  %v3443_v49 = vpack.c.bf16 %v3425_v33, %v3424_v9 }
 0x39a   : > { %v4225_v8 = vpop.f32.mrb[171].mxu1 }
 0x39b   : > { %v3384_v2 = vadd.f32 %v4223_v1, %v6507_v21  ;;  %v4226_v0 = vadd.f32 %v4225_v8, %v4224_v59  ;;  %4298 = vmatmul.mubr.bf16.gmra.mrb[200].mxu1 %v3443_v49 }
 0x39d   : > { %v3387_v6 = vadd.f32 %v4226_v0, %v6507_v21  ;;  %v3426_v62 = vmax.f32 %v3384_v2, 0.0 }
 0x39f   : > { %v3427_v37 = vmax.f32 %v3387_v6, 0.0  ;;  %v4227_v16 = vpop.f32.mrb[172].mxu1 }
 0x3a0   : > { %v4228_v25 = vpop.f32.mrb[173].mxu1 }
 0x3a1   : > { %v4229_v41 = vadd.f32 %v4228_v25, %v4227_v16  ;;  %v4230_v39 = vpop.f32.mrb[174].mxu1  ;;  %v3444_v17 = vpack.c.bf16 %v3427_v37, %v3426_v62 }
 0x3a2   : > { %v4231_v3 = vpop.f32.mrb[175].mxu1 }
 0x3a3   : > { %v3392_v32 = vadd.f32 %v4229_v41, %v6507_v21  ;;  %v4232_v56 = vadd.f32 %v4231_v3, %v4230_v39  ;;  %4301 = vmatprep.mubr.bf16.mxu1 %v3444_v17 }
 0x3a5   : > { %v3395_v58 = vadd.f32 %v4232_v56, %v6507_v21  ;;  %v3428_v4 = vmax.f32 %v3392_v32, 0.0 }
 0x3a7   : > { %v3429_v31 = vmax.f32 %v3395_v58, 0.0 }
 0x3a9   : > { %v3445_v18 = vpack.c.bf16 %v3429_v31, %v3428_v4 }
 0x3ab   : > { %4302 = vmatmul.mubr.bf16.gmra.mrb[204].mxu1 %v3445_v18 }
 0x40e   : > { %v4275_v11 = vpop.f32.mrb[176].mxu1 }
 0x40f   : > { %v3560_v30 = vadd.f32 %v4275_v11, %v6547_v24  ;;  %v3551_v34 = vpop.f32.mrb[177].mxu1 }
 0x410   : > { %v3552_v10 = vadd.f32 %v6547_v24, %v3551_v34  ;;  %v4276_v50 = vpop.f32.mrb[178].mxu1 }
 0x411   : > { %3680 = vst [vmem:[%s6551_s16 + $0x10] sm:$0xff] %v3560_v30  ;;  %v3563_v21 = vadd.f32 %v4276_v50, %v6547_v24  ;;  %v3554_v61 = vpop.f32.mrb[179].mxu1 }
 0x412   : > { %3678 = vst [vmem:[%s6551_s16] sm:$0xff] %v3552_v10  ;;  %v3555_v42 = vadd.f32 %v6547_v24, %v3554_v61 }
 0x413   : > { %3681 = vst [vmem:[%s6551_s16 + $0x18] sm:$0xff] %v3563_v21 }
 0x414   : > { %3679 = vst [vmem:[%s6551_s16 + $0x8] sm:$0xff] %v3555_v42 }
 0x41e   : > { %v4279_v7 = vpop.f32.mrb[180].mxu1 }
 0x41f   : > { %v3576_v46 = vadd.f32 %v4279_v7, %v6547_v24  ;;  %v3567_v40 = vpop.f32.mrb[181].mxu1 }
 0x420   : > { %v3568_v27 = vadd.f32 %v6547_v24, %v3567_v40  ;;  %v4280_v29 = vpop.f32.mrb[182].mxu1 }
 0x421   : > { %3684 = vst [vmem:[%s6551_s16 + $0x30] sm:$0xff] %v3576_v46  ;;  %v3579_v23 = vadd.f32 %v4280_v29, %v6547_v24  ;;  %v3570_v57 = vpop.f32.mrb[183].mxu1 }
 0x422   : > { %3682 = vst [vmem:[%s6551_s16 + $0x20] sm:$0xff] %v3568_v27  ;;  %v3571_v14 = vadd.f32 %v6547_v24, %v3570_v57 }
 0x423   : > { %3685 = vst [vmem:[%s6551_s16 + $0x38] sm:$0xff] %v3579_v23 }
 0x424   : > { %3683 = vst [vmem:[%s6551_s16 + $0x28] sm:$0xff] %v3571_v14 }
 0x42e   : > { %v4283_v36 = vpop.f32.mrb[184].mxu1 }
 0x42f   : > { %v3592_v38 = vadd.f32 %v4283_v36, %v6547_v24  ;;  %v3583_v47 = vpop.f32.mrb[185].mxu1 }
 0x430   : > { %v3584_v63 = vadd.f32 %v6547_v24, %v3583_v47  ;;  %v4284_v13 = vpop.f32.mrb[186].mxu1 }
 0x431   : > { %3688 = vst [vmem:[%s6551_s16 + $0x50] sm:$0xff] %v3592_v38  ;;  %v3595_v28 = vadd.f32 %v4284_v13, %v6547_v24  ;;  %v3586_v51 = vpop.f32.mrb[187].mxu1 }
 0x432   : > { %3686 = vst [vmem:[%s6551_s16 + $0x40] sm:$0xff] %v3584_v63  ;;  %v3587_v60 = vadd.f32 %v6547_v24, %v3586_v51 }
 0x433   : > { %3689 = vst [vmem:[%s6551_s16 + $0x58] sm:$0xff] %v3595_v28 }
 0x434   : > { %3687 = vst [vmem:[%s6551_s16 + $0x48] sm:$0xff] %v3587_v60 }
 0x43e   : > { %v4287_v5 = vpop.f32.mrb[188].mxu1 }
 0x43f   : > { %v3608_v43 = vadd.f32 %v4287_v5, %v6547_v24  ;;  %v3599_v48 = vpop.f32.mrb[189].mxu1 }
 0x440   : > { %v3600_v12 = vadd.f32 %v6547_v24, %v3599_v48  ;;  %v4288_v45 = vpop.f32.mrb[190].mxu1 }
 0x441   : > { %3692 = vst [vmem:[%s6551_s16 + $0x70] sm:$0xff] %v3608_v43  ;;  %v3611_v22 = vadd.f32 %v4288_v45, %v6547_v24  ;;  %v3602_v20 = vpop.f32.mrb[191].mxu1 }
 0x442   : > { %3690 = vst [vmem:[%s6551_s16 + $0x60] sm:$0xff] %v3600_v12  ;;  %v3603_v15 = vadd.f32 %v6547_v24, %v3602_v20 }
 0x443   : > { %3693 = vst [vmem:[%s6551_s16 + $0x78] sm:$0xff] %v3611_v22 }
 0x444   : > { %3691 = vst [vmem:[%s6551_s16 + $0x68] sm:$0xff] %v3603_v15 }
 0x44e   : > { %v4291_v54 = vpop.f32.mrb[192].mxu1 }
 0x44f   : > { %v3624_v52 = vadd.f32 %v4291_v54, %v6547_v24  ;;  %v3615_v19 = vpop.f32.mrb[193].mxu1 }
 0x450   : > { %v3616_v35 = vadd.f32 %v6547_v24, %v3615_v19  ;;  %v4292_v44 = vpop.f32.mrb[194].mxu1 }
 0x451   : > { %3696 = vst [vmem:[%s6551_s16 + $0x90] sm:$0xff] %v3624_v52  ;;  %v3627_v55 = vadd.f32 %v4292_v44, %v6547_v24  ;;  %v3618_v9 = vpop.f32.mrb[195].mxu1 }
 0x452   : > { %3694 = vst [vmem:[%s6551_s16 + $0x80] sm:$0xff] %v3616_v35  ;;  %v3619_v33 = vadd.f32 %v6547_v24, %v3618_v9 }
 0x453   : > { %3697 = vst [vmem:[%s6551_s16 + $0x98] sm:$0xff] %v3627_v55 }
 0x454   : > { %3695 = vst [vmem:[%s6551_s16 + $0x88] sm:$0xff] %v3619_v33 }
 0x45e   : > { %v4295_v53 = vpop.f32.mrb[196].mxu1 }
 0x45f   : > { %v3640_v26 = vadd.f32 %v4295_v53, %v6547_v24  ;;  %v3631_v1 = vpop.f32.mrb[197].mxu1 }
 0x460   : > { %v3632_v59 = vadd.f32 %v6547_v24, %v3631_v1  ;;  %v4296_v49 = vpop.f32.mrb[198].mxu1 }
 0x461   : > { %3700 = vst [vmem:[%s6551_s16 + $0xb0] sm:$0xff] %v3640_v26  ;;  %v3643_v8 = vadd.f32 %v4296_v49, %v6547_v24  ;;  %v3634_v2 = vpop.f32.mrb[199].mxu1 }
 0x462   : > { %3698 = vst [vmem:[%s6551_s16 + $0xa0] sm:$0xff] %v3632_v59  ;;  %v3635_v0 = vadd.f32 %v6547_v24, %v3634_v2 }
 0x463   : > { %3701 = vst [vmem:[%s6551_s16 + $0xb8] sm:$0xff] %v3643_v8 }
 0x464   : > { %3699 = vst [vmem:[%s6551_s16 + $0xa8] sm:$0xff] %v3635_v0 }
 0x46e   : > { %v4299_v6 = vpop.f32.mrb[200].mxu1 }
 0x46f   : > { %v3656_v62 = vadd.f32 %v4299_v6, %v6547_v24  ;;  %v3647_v37 = vpop.f32.mrb[201].mxu1 }
 0x470   : > { %v3648_v16 = vadd.f32 %v6547_v24, %v3647_v37  ;;  %v4300_v25 = vpop.f32.mrb[202].mxu1 }
 0x471   : > { %3704 = vst [vmem:[%s6551_s16 + $0xd0] sm:$0xff] %v3656_v62  ;;  %v3659_v41 = vadd.f32 %v4300_v25, %v6547_v24  ;;  %v3650_v39 = vpop.f32.mrb[203].mxu1 }
 0x472   : > { %3702 = vst [vmem:[%s6551_s16 + $0xc0] sm:$0xff] %v3648_v16  ;;  %v3651_v17 = vadd.f32 %v6547_v24, %v3650_v39 }
 0x473   : > { %3705 = vst [vmem:[%s6551_s16 + $0xd8] sm:$0xff] %v3659_v41 }
 0x474   : > { %3703 = vst [vmem:[%s6551_s16 + $0xc8] sm:$0xff] %v3651_v17 }
 0x47e   : > { %v4303_v3 = vpop.f32.mrb[204].mxu1 }
 0x47f   : > { %v3672_v32 = vadd.f32 %v4303_v3, %v6547_v24  ;;  %v3663_v56 = vpop.f32.mrb[205].mxu1 }
 0x480   : > { %v3664_v58 = vadd.f32 %v6547_v24, %v3663_v56  ;;  %v4304_v4 = vpop.f32.mrb[206].mxu1 }
 0x481   : > { %3708 = vst [vmem:[%s6551_s16 + $0xf0] sm:$0xff] %v3672_v32  ;;  %v3675_v31 = vadd.f32 %v4304_v4, %v6547_v24  ;;  %v3666_v18 = vpop.f32.mrb[207].mxu1 }
 0x482   : > { %3706 = vst [vmem:[%s6551_s16 + $0xe0] sm:$0xff] %v3664_v58  ;;  %v3667_v11 = vadd.f32 %v6547_v24, %v3666_v18 }
 0x483   : > { %3709 = vst [vmem:[%s6551_s16 + $0xf8] sm:$0xff] %v3675_v31 }
 0x484   : > { %3707 = vst [vmem:[%s6551_s16 + $0xe8] sm:$0xff] %v3667_v11 }
 0x485   : > { %5149 = shalt.err (!%p5146_p3)
}
 0x486   : > { %s5150_s9 = scalar_lea.hbm %s6616_s21, 4096  ;;  %s5154_s15 = scalar_lea.hbm %s6674_s7, 20480 }
 0x487   : > { %p5151_p4 = scmp.ne.s32.totalorder %s6616_s21, %s5150_s9  ;;  %p5155_p9 = scmp.lt.u32.totalorder %s6616_s21, %s6674_s7 }
 0x488   : > { %p5156_p10 = scmp.lt.u32.totalorder %s5154_s15, %s5150_s9  ;;  %p5158_p12 = scmp.lt.u32.totalorder %s5150_s9, %s6616_s21 }
 0x489   : > { %p5152_p7 = pnand %p5151_p4, %p5282_p5 }
 0x48a   : > { %p5157_p11 = por %p5156_p10, %p5155_p9 }
 0x48b   : > { %p5153_p8 = pneg %p5152_p7 }
 0x48c   : > { %p5159_p13 = por %p5158_p12, %p5157_p11 }
 0x48e   : > { %p5160_p0 = pnand %p5159_p13, %p5153_p8 }
 0x490   : > { %5163 = shalt.err (!%p5160_p0)
}
 0x491   : > { %s5202_s13 = smov 128   ;;  %s5203_s19 = smov 8  }
 0x492   : > { %4658 = dma.vmem_to_hbm [thread:$0]  (%p5282_p5), %s6618_s18, 4096, %s6616_s21, %s6626_s28, %s5202_s13, %s5202_s13, %s5203_s19  }
 0x493 PF: > { %p4664_p1 = scmp.ge.s32.totalorder %s5198_s27, 2  ;;  %s3739_s20 = sand.u32 1, %s5186_s24  }
 0x494   : > { %s3740_s22 = scalar_lea.sflag [#allocation3], %s3739_s20 }
 0x495   : > { %p4661_p2 = pnand %p4664_p1, %p5286_p6 }
 0x497   : > { %5181 = dma.done.wait (!%p4661_p2), %s3740_s22, 4096  }
 0x498   : > { %5183 = vsyncadd (!%p4661_p2), %s3740_s22, 4294963200  ;;  %p17_p3 = scmp.ge.s32.totalorder %s5269_s30, 7   ;;  %s6754_s24 = smov %s5190_s25 }
 0x499   : > { %s6755_s25 = smov %s5194_s26  ;;  %s6756_s26 = smov %s5280_s10 }
 0x49a   : > { %s6757_s27 = smov %s5269_s30  ;;  %19 = sbr.rel (!%p17_p3) target bundleno = 3 (0x3), region = 83 }
 0x4a1   :  { %3745 = vsyncpa [#allocation3], 1 }
 0x4a2   :  { %3747 = vsyncpa [#allocation3 + $0x1], 1 }

</bundles_post_ra>
